<compile_context>
chip_gen: v5e
topology: v5e:2x2
jax: 0.10.0
libtpu: 0.0.40
codegen_flags: <defaults>
</compile_context>

<pallas_src>
import math
from functools import partial

import jax
import jax.numpy as jnp
from jax import lax
from jax.experimental import pallas as pl
from jax.experimental.pallas import tpu as pltpu


# ----------------------------- kernel helpers ------------------------------ #

def _layer_norm(x, gamma, beta, eps=1e-5):
    mu = jnp.mean(x, axis=-1, keepdims=True)
    var = jnp.mean((x - mu) ** 2, axis=-1, keepdims=True)
    return (x - mu) * lax.rsqrt(var + eps) * gamma + beta


def _mixer_kernel(vis_ref, aud_ref,
                  w_q_ref, w_k_ref, w_v_ref,
                  b_q_ref, b_k_ref, b_v_ref,
                  w_o_ref, b_o_ref,
                  ln1_g_ref, ln1_b_ref,
                  w1_ref, b1_ref, w2_ref, b2_ref,
                  ln2_g_ref, ln2_b_ref,
                  vis_out_ref, aud_out_ref,
                  x_scratch,
                  *, n_head: int):
    sv, e = vis_ref.shape
    sa, _ = aud_ref.shape
    s = sv + sa
    dh = e // n_head
    scale = 1.0 / math.sqrt(dh)

    # torch.cat((vis_selectors, aud_selectors), dim=1) — build the concatenated
    # selector sequence in VMEM (no host-side concat / extra HBM pass).
    x_scratch[0:sv, :] = vis_ref[...].astype(jnp.float32)
    x_scratch[sv:s, :] = aud_ref[...].astype(jnp.float32)
    x = x_scratch[...]

    # ---- Multi-head self-attention over all (vis + aud) selectors ---------- #
    # Weights are pre-split per head in the wrapper: w_q/k/v: (H, E, Dh),
    # w_o: (H, Dh, E) so the kernel never lane-slices values.
    attn = jnp.zeros((s, e), dtype=jnp.float32)
    for h in range(n_head):                       # static unroll (n_head small)
        qh = jnp.dot(x, w_q_ref[h], preferred_element_type=jnp.float32) + b_q_ref[h]
        kh = jnp.dot(x, w_k_ref[h], preferred_element_type=jnp.float32) + b_k_ref[h]
        vh = jnp.dot(x, w_v_ref[h], preferred_element_type=jnp.float32) + b_v_ref[h]
        scores = jnp.dot(qh, kh.T, preferred_element_type=jnp.float32) * scale
        scores = scores - jnp.max(scores, axis=-1, keepdims=True)
        probs = jnp.exp(scores)
        probs = probs / jnp.sum(probs, axis=-1, keepdims=True)
        ctx = jnp.dot(probs, vh, preferred_element_type=jnp.float32)      # (S, Dh)
        attn = attn + jnp.dot(ctx, w_o_ref[h], preferred_element_type=jnp.float32)
    attn = attn + b_o_ref[...]

    # Residual + LayerNorm (post-norm, PyTorch TransformerEncoderLayer default;
    # dropout is identity in eval mode).
    x = _layer_norm(x + attn, ln1_g_ref[...], ln1_b_ref[...])

    # ---- Feed-forward: Linear(E -> 4E) -> ReLU -> Linear(4E -> E) ---------- #
    h1 = jnp.dot(x, w1_ref[...], preferred_element_type=jnp.float32) + b1_ref[...]
    h1 = jnp.maximum(h1, 0.0)
    ff = jnp.dot(h1, w2_ref[...], preferred_element_type=jnp.float32) + b2_ref[...]
    x = _layer_norm(x + ff, ln2_g_ref[...], ln2_b_ref[...])

    # torch.split(mixed, [vis_n, aud_n], dim=1) — write both outputs directly.
    x_scratch[...] = x
    vis_out_ref[...] = x_scratch[0:sv, :].astype(vis_out_ref.dtype)
    aud_out_ref[...] = x_scratch[sv:s, :].astype(aud_out_ref.dtype)


# ------------------------------ Pallas wrapper ------------------------------ #

_WEIGHT_ORDER = ("w_q", "w_k", "w_v", "b_q", "b_k", "b_v", "w_o", "b_o",
                 "ln1_g", "ln1_b", "w1", "b1", "w2", "b2", "ln2_g", "ln2_b")


def _const_index_map(ndim):
    return lambda b: (0,) * ndim


def mix_selectors_pallas(vis_selectors, aud_selectors, params, *, n_head):
    """Single-layer transformer-encoder mixing of the concatenated selectors."""
    B, Sv, E = vis_selectors.shape
    Bb, Sa, Ea = aud_selectors.shape
    assert B == Bb and E == Ea and E % n_head == 0
    S = Sv + Sa

    weights = [params[k] for k in _WEIGHT_ORDER]

    flops_per_b = 24 * S * E * E + 4 * S * S * E
    transc_per_b = n_head * S * S + 2 * S
    in_bytes = sum(int(a.size) * a.dtype.itemsize
                   for a in (vis_selectors, aud_selectors, *weights))
    out_bytes = (int(vis_selectors.size) + int(aud_selectors.size)) * vis_selectors.dtype.itemsize
    cost = pl.CostEstimate(flops=B * flops_per_b,
                           transcendentals=B * transc_per_b,
                           bytes_accessed=in_bytes + out_bytes)

    sel_in_specs = [
        pl.BlockSpec((None, Sv, E), lambda b: (b, 0, 0)),
        pl.BlockSpec((None, Sa, E), lambda b: (b, 0, 0)),
    ]
    weight_specs = [pl.BlockSpec(w.shape, _const_index_map(w.ndim)) for w in weights]

    vis_out, aud_out = pl.pallas_call(
        partial(_mixer_kernel, n_head=n_head),
        out_shape=(jax.ShapeDtypeStruct((B, Sv, E), vis_selectors.dtype),
                   jax.ShapeDtypeStruct((B, Sa, E), aud_selectors.dtype)),
        grid=(B,),
        in_specs=sel_in_specs + weight_specs,
        out_specs=(pl.BlockSpec((None, Sv, E), lambda b: (b, 0, 0)),
                   pl.BlockSpec((None, Sa, E), lambda b: (b, 0, 0))),
        scratch_shapes=[pltpu.VMEM((S, E), jnp.float32)],
        compiler_params=pltpu.CompilerParams(dimension_semantics=("parallel",)),
        cost_estimate=cost,
    )(vis_selectors, aud_selectors, *weights)
    return vis_out, aud_out


def feature_selector_mixing_transformer(vis_selectors, aud_selectors,
                                        vis_context, aud_context, params, *,
                                        vis_n_selectors, aud_n_selectors, n_head,
                                        use_mixer=True, use_selector=False):
    """Forward pass of FeatureSelectorMixingTransformer (mixer stage in Pallas)."""
    del vis_context, aud_context  # only consumed by the (ablated) selector stage
    assert vis_selectors.shape[1] == vis_n_selectors
    assert aud_selectors.shape[1] == aud_n_selectors
    if use_mixer:
        vis_selectors, aud_selectors = mix_selectors_pallas(
            vis_selectors, aud_selectors, params, n_head=n_head)
    if use_selector:
        # TODO(synk): v_selector / a_selector come from instantiate_from_config;
        # their module definition is not part of the spec, so this branch is ablated.
        raise NotImplementedError("selector stage not specified in the reference module")
    return vis_selectors, aud_selectors


# --------------------------- params & pure-JAX ref -------------------------- #

def init_params(key, n_embd, n_head, dtype=jnp.float32):
    """Mirror init_weights: Linear weights ~ N(0, 0.02), biases 0, LayerNorm 1/0."""
    E, H = n_embd, n_head
    Dh, F = E // H, 4 * E
    ks = jax.random.split(key, 6)
    std = 0.02

    def lin(k, shape):
        return (std * jax.random.normal(k, shape)).astype(dtype)

    return {
        # per-head layouts so the kernel indexes heads on the leading axis
        "w_q": lin(ks[0], (E, E)).reshape(E, H, Dh).transpose(1, 0, 2),  # (H, E, Dh)
        "w_k": lin(ks[1], (E, E)).reshape(E, H, Dh).transpose(1, 0, 2),
        "w_v": lin(ks[2], (E, E)).reshape(E, H, Dh).transpose(1, 0, 2),
        "b_q": jnp.zeros((H, 1, Dh), dtype),
        "b_k": jnp.zeros((H, 1, Dh), dtype),
        "b_v": jnp.zeros((H, 1, Dh), dtype),
        "w_o": lin(ks[3], (E, E)).reshape(H, Dh, E),                     # (H, Dh, E)
        "b_o": jnp.zeros((1, E), dtype),
        "ln1_g": jnp.ones((1, E), dtype),
        "ln1_b": jnp.zeros((1, E), dtype),
        "w1": lin(ks[4], (E, F)),
        "b1": jnp.zeros((1, F), dtype),
        "w2": lin(ks[5], (F, E)),
        "b2": jnp.zeros((1, E), dtype),
        "ln2_g": jnp.ones((1, E), dtype),
        "ln2_b": jnp.zeros((1, E), dtype),
    }


def _ln_ref(x, g, b, eps=1e-5):
    mu = jnp.mean(x, axis=-1, keepdims=True)
    var = jnp.mean((x - mu) ** 2, axis=-1, keepdims=True)
    return (x - mu) / jnp.sqrt(var + eps) * g + b


def _reference_forward(vis, aud, p, n_head):
    x = jnp.concatenate([vis, aud], axis=1).astype(jnp.float32)
    B, S, E = x.shape
    H = n_head
    Dh = E // H
    q = jnp.einsum("bse,hed->bhsd", x, p["w_q"]) + p["b_q"].reshape(1, H, 1, Dh)
    k = jnp.einsum("bse,hed->bhsd", x, p["w_k"]) + p["b_k"].reshape(1, H, 1, Dh)
    v = jnp.einsum("bse,hed->bhsd", x, p["w_v"]) + p["b_v"].reshape(1, H, 1, Dh)
    scores = jnp.einsum("bhqd,bhkd->bhqk", q, k) / math.sqrt(Dh)
    probs = jax.nn.softmax(scores, axis=-1)
    ctx = jnp.einsum("bhqk,bhkd->bhqd", probs, v)
    attn = jnp.einsum("bhsd,hde->bse", ctx, p["w_o"]) + p["b_o"][0]
    x = _ln_ref(x + attn, p["ln1_g"][0], p["ln1_b"][0])
    h1 = jnp.maximum(jnp.einsum("bse,ef->bsf", x, p["w1"]) + p["b1"][0], 0.0)
    ff = jnp.einsum("bsf,fe->bse", h1, p["w2"]) + p["b2"][0]
    x = _ln_ref(x + ff, p["ln2_g"][0], p["ln2_b"][0])
    return x[:, :vis.shape[1]], x[:, vis.shape[1]:]


# ----------------------------------- main ----------------------------------- #

if __name__ == "__main__":
    key = jax.random.PRNGKey(0)
    B, n_embd, n_head = 2, 32, 4
    vis_n, aud_n = 4, 4
    ctx_len = 16

    keys = jax.random.split(key, 5)
    vis_selectors = jax.random.normal(keys[0], (B, vis_n, n_embd), jnp.float32)
    aud_selectors = jax.random.normal(keys[1], (B, aud_n, n_embd), jnp.float32)
    vis_context = jax.random.normal(keys[2], (B, ctx_len, n_embd), jnp.float32)
    aud_context = jax.random.normal(keys[3], (B, ctx_len, n_embd), jnp.float32)
    params = init_params(keys[4], n_embd, n_head)

    vis_out, aud_out = feature_selector_mixing_transformer(
        vis_selectors, aud_selectors, vis_context, aud_context, params,
        vis_n_selectors=vis_n, aud_n_selectors=aud_n, n_head=n_head,
        use_mixer=True, use_selector=False)
    vis_out, aud_out = jax.block_until_ready((vis_out, aud_out))

    assert vis_out.shape == (B, vis_n, n_embd), vis_out.shape
    assert aud_out.shape == (B, aud_n, n_embd), aud_out.shape

    ref_v, ref_a = _reference_forward(vis_selectors, aud_selectors, params, n_head)
    assert bool(jnp.allclose(vis_out, ref_v, atol=1e-2, rtol=1e-2)), "vis mismatch"
    assert bool(jnp.allclose(aud_out, ref_a, atol=1e-2, rtol=1e-2)), "aud mismatch"

    print("KERNEL_OK")
</pallas_src>

<mosaic_0001>
module attributes {stable_mosaic.version = 11 : i64} {
  func.func @_mixer_kernel(%arg0: i32, %arg1: memref<1x4x32xf32, #tpu.memory_space<vmem>>, %arg2: memref<1x4x32xf32, #tpu.memory_space<vmem>>, %arg3: memref<4x32x8xf32, #tpu.memory_space<vmem>>, %arg4: memref<4x32x8xf32, #tpu.memory_space<vmem>>, %arg5: memref<4x32x8xf32, #tpu.memory_space<vmem>>, %arg6: memref<4x1x8xf32, #tpu.memory_space<vmem>>, %arg7: memref<4x1x8xf32, #tpu.memory_space<vmem>>, %arg8: memref<4x1x8xf32, #tpu.memory_space<vmem>>, %arg9: memref<4x8x32xf32, #tpu.memory_space<vmem>>, %arg10: memref<1x32xf32, #tpu.memory_space<vmem>>, %arg11: memref<1x32xf32, #tpu.memory_space<vmem>>, %arg12: memref<1x32xf32, #tpu.memory_space<vmem>>, %arg13: memref<32x128xf32, #tpu.memory_space<vmem>>, %arg14: memref<1x128xf32, #tpu.memory_space<vmem>>, %arg15: memref<128x32xf32, #tpu.memory_space<vmem>>, %arg16: memref<1x32xf32, #tpu.memory_space<vmem>>, %arg17: memref<1x32xf32, #tpu.memory_space<vmem>>, %arg18: memref<1x32xf32, #tpu.memory_space<vmem>>, %arg19: memref<1x4x32xf32, #tpu.memory_space<vmem>>, %arg20: memref<1x4x32xf32, #tpu.memory_space<vmem>>, %arg21: memref<8x32xf32, #tpu.memory_space<vmem>>) attributes {dimension_semantics = [#tpu.dimension_semantics<parallel>], iteration_bounds = array<i64: 2>, scalar_prefetch = 0 : i64, scratch_operands = 1 : i64, tpu.core_type = #tpu.core_type<tc>, window_params = [{transform_indices = @transform_0, window_bounds = array<i64: 1, 4, 32>}, {transform_indices = @transform_1, window_bounds = array<i64: 1, 4, 32>}, {pipeline_mode = #tpu.pipeline_mode<synchronous>, transform_indices = @transform_2, window_bounds = array<i64: 4, 32, 8>}, {pipeline_mode = #tpu.pipeline_mode<synchronous>, transform_indices = @transform_3, window_bounds = array<i64: 4, 32, 8>}, {pipeline_mode = #tpu.pipeline_mode<synchronous>, transform_indices = @transform_4, window_bounds = array<i64: 4, 32, 8>}, {pipeline_mode = #tpu.pipeline_mode<synchronous>, transform_indices = @transform_5, window_bounds = array<i64: 4, 1, 8>}, {pipeline_mode = #tpu.pipeline_mode<synchronous>, transform_indices = @transform_6, window_bounds = array<i64: 4, 1, 8>}, {pipeline_mode = #tpu.pipeline_mode<synchronous>, transform_indices = @transform_7, window_bounds = array<i64: 4, 1, 8>}, {pipeline_mode = #tpu.pipeline_mode<synchronous>, transform_indices = @transform_8, window_bounds = array<i64: 4, 8, 32>}, {pipeline_mode = #tpu.pipeline_mode<synchronous>, transform_indices = @transform_9, window_bounds = array<i64: 1, 32>}, {pipeline_mode = #tpu.pipeline_mode<synchronous>, transform_indices = @transform_10, window_bounds = array<i64: 1, 32>}, {pipeline_mode = #tpu.pipeline_mode<synchronous>, transform_indices = @transform_11, window_bounds = array<i64: 1, 32>}, {pipeline_mode = #tpu.pipeline_mode<synchronous>, transform_indices = @transform_12, window_bounds = array<i64: 32, 128>}, {pipeline_mode = #tpu.pipeline_mode<synchronous>, transform_indices = @transform_13, window_bounds = array<i64: 1, 128>}, {pipeline_mode = #tpu.pipeline_mode<synchronous>, transform_indices = @transform_14, window_bounds = array<i64: 128, 32>}, {pipeline_mode = #tpu.pipeline_mode<synchronous>, transform_indices = @transform_15, window_bounds = array<i64: 1, 32>}, {pipeline_mode = #tpu.pipeline_mode<synchronous>, transform_indices = @transform_16, window_bounds = array<i64: 1, 32>}, {pipeline_mode = #tpu.pipeline_mode<synchronous>, transform_indices = @transform_17, window_bounds = array<i64: 1, 32>}, {transform_indices = @transform_18, window_bounds = array<i64: 1, 4, 32>}, {transform_indices = @transform_19, window_bounds = array<i64: 1, 4, 32>}]} {
    %c0 = arith.constant 0 : index
    %c0_0 = arith.constant 0 : index
    %c0_1 = arith.constant 0 : index
    %0 = vector.load %arg1[%c0, %c0_0, %c0_1] : memref<1x4x32xf32, #tpu.memory_space<vmem>>, vector<1x4x32xf32>
    %1 = vector.shape_cast %0 : vector<1x4x32xf32> to vector<4x32xf32>
    %c0_2 = arith.constant 0 : index
    %c0_3 = arith.constant 0 : index
    %2 = vector.load %arg21[%c0_2, %c0_3] : memref<8x32xf32, #tpu.memory_space<vmem>>, vector<4x32xf32>
    tpu.vector_store %arg21[%c0_2, %c0_3], %1 {strides = array<i32>} : memref<8x32xf32, #tpu.memory_space<vmem>>, vector<4x32xf32>,
    %c0_4 = arith.constant 0 : index
    %c0_5 = arith.constant 0 : index
    %c0_6 = arith.constant 0 : index
    %3 = vector.load %arg2[%c0_4, %c0_5, %c0_6] : memref<1x4x32xf32, #tpu.memory_space<vmem>>, vector<1x4x32xf32>
    %4 = vector.shape_cast %3 : vector<1x4x32xf32> to vector<4x32xf32>
    %c4 = arith.constant 4 : index
    %c0_7 = arith.constant 0 : index
    %5 = vector.load %arg21[%c4, %c0_7] : memref<8x32xf32, #tpu.memory_space<vmem>>, vector<4x32xf32>
    tpu.vector_store %arg21[%c4, %c0_7], %4 {strides = array<i32>} : memref<8x32xf32, #tpu.memory_space<vmem>>, vector<4x32xf32>,
    %c0_8 = arith.constant 0 : index
    %c0_9 = arith.constant 0 : index
    %6 = vector.load %arg21[%c0_8, %c0_9] : memref<8x32xf32, #tpu.memory_space<vmem>>, vector<8x32xf32>
    %cst = arith.constant 0.000000e+00 : f32
    %7 = vector.broadcast %cst : f32 to vector<8x32xf32>
    %c0_10 = arith.constant 0 : index
    %c0_11 = arith.constant 0 : index
    %c0_12 = arith.constant 0 : index
    %8 = vector.load %arg3[%c0_10, %c0_11, %c0_12] : memref<4x32x8xf32, #tpu.memory_space<vmem>>, vector<1x32x8xf32>
    %9 = vector.shape_cast %8 : vector<1x32x8xf32> to vector<32x8xf32>
    %cst_13 = arith.constant dense<0.000000e+00> : vector<8x8xf32>
    %10 = tpu.matmul %6, %9, %cst_13 {dimension_numbers = #tpu.dot_dimension_numbers<[1], [0], [0], [1], [0, 0, 1, 1], [], []>} : vector<8x32xf32>, vector<32x8xf32>, vector<8x8xf32> -> vector<8x8xf32>
    %c0_14 = arith.constant 0 : index
    %c0_15 = arith.constant 0 : index
    %c0_16 = arith.constant 0 : index
    %11 = vector.load %arg6[%c0_14, %c0_15, %c0_16] : memref<4x1x8xf32, #tpu.memory_space<vmem>>, vector<1x1x8xf32>
    %12 = vector.shape_cast %11 : vector<1x1x8xf32> to vector<1x8xf32>
    %13 = vector.broadcast %12 : vector<1x8xf32> to vector<8x8xf32>
    %14 = arith.addf %10, %13 : vector<8x8xf32>
    %c0_17 = arith.constant 0 : index
    %c0_18 = arith.constant 0 : index
    %c0_19 = arith.constant 0 : index
    %15 = vector.load %arg4[%c0_17, %c0_18, %c0_19] : memref<4x32x8xf32, #tpu.memory_space<vmem>>, vector<1x32x8xf32>
    %16 = vector.shape_cast %15 : vector<1x32x8xf32> to vector<32x8xf32>
    %cst_20 = arith.constant dense<0.000000e+00> : vector<8x8xf32>
    %17 = tpu.matmul %6, %16, %cst_20 {dimension_numbers = #tpu.dot_dimension_numbers<[1], [0], [0], [1], [0, 0, 1, 1], [], []>} : vector<8x32xf32>, vector<32x8xf32>, vector<8x8xf32> -> vector<8x8xf32>
    %c0_21 = arith.constant 0 : index
    %c0_22 = arith.constant 0 : index
    %c0_23 = arith.constant 0 : index
    %18 = vector.load %arg7[%c0_21, %c0_22, %c0_23] : memref<4x1x8xf32, #tpu.memory_space<vmem>>, vector<1x1x8xf32>
    %19 = vector.shape_cast %18 : vector<1x1x8xf32> to vector<1x8xf32>
    %20 = vector.broadcast %19 : vector<1x8xf32> to vector<8x8xf32>
    %21 = arith.addf %17, %20 : vector<8x8xf32>
    %c0_24 = arith.constant 0 : index
    %c0_25 = arith.constant 0 : index
    %c0_26 = arith.constant 0 : index
    %22 = vector.load %arg5[%c0_24, %c0_25, %c0_26] : memref<4x32x8xf32, #tpu.memory_space<vmem>>, vector<1x32x8xf32>
    %23 = vector.shape_cast %22 : vector<1x32x8xf32> to vector<32x8xf32>
    %cst_27 = arith.constant dense<0.000000e+00> : vector<8x8xf32>
    %24 = tpu.matmul %6, %23, %cst_27 {dimension_numbers = #tpu.dot_dimension_numbers<[1], [0], [0], [1], [0, 0, 1, 1], [], []>} : vector<8x32xf32>, vector<32x8xf32>, vector<8x8xf32> -> vector<8x8xf32>
    %c0_28 = arith.constant 0 : index
    %c0_29 = arith.constant 0 : index
    %c0_30 = arith.constant 0 : index
    %25 = vector.load %arg8[%c0_28, %c0_29, %c0_30] : memref<4x1x8xf32, #tpu.memory_space<vmem>>, vector<1x1x8xf32>
    %26 = vector.shape_cast %25 : vector<1x1x8xf32> to vector<1x8xf32>
    %27 = vector.broadcast %26 : vector<1x8xf32> to vector<8x8xf32>
    %28 = arith.addf %24, %27 : vector<8x8xf32>
    %29 = tpu.transpose %21, [1, 0] : vector<8x8xf32> -> vector<8x8xf32>
    %cst_31 = arith.constant dense<0.000000e+00> : vector<8x8xf32>
    %30 = tpu.matmul %14, %29, %cst_31 {dimension_numbers = #tpu.dot_dimension_numbers<[1], [0], [0], [1], [0, 0, 1, 1], [], []>} : vector<8x8xf32>, vector<8x8xf32>, vector<8x8xf32> -> vector<8x8xf32>
    %cst_32 = arith.constant 0.353553385 : f32
    %31 = vector.broadcast %cst_32 : f32 to vector<8x8xf32>
    %32 = arith.mulf %30, %31 : vector<8x8xf32>
    %cst_33 = arith.constant dense<0xFF800000> : vector<8xf32>
    %33 = vector.multi_reduction <maximumf>, %32, %cst_33 [1] : vector<8x8xf32> to vector<8xf32>
    %34 = vector.shape_cast %33 : vector<8xf32> to vector<8x1xf32>
    %35 = vector.broadcast %34 : vector<8x1xf32> to vector<8x8xf32>
    %36 = arith.subf %32, %35 : vector<8x8xf32>
    %37 = math.exp %36 : vector<8x8xf32>
    %cst_34 = arith.constant dense<0.000000e+00> : vector<8xf32>
    %38 = vector.multi_reduction <add>, %37, %cst_34 [1] : vector<8x8xf32> to vector<8xf32>
    %39 = vector.shape_cast %38 : vector<8xf32> to vector<8x1xf32>
    %40 = vector.broadcast %39 : vector<8x1xf32> to vector<8x8xf32>
    %41 = arith.divf %37, %40 : vector<8x8xf32>
    %cst_35 = arith.constant dense<0.000000e+00> : vector<8x8xf32>
    %42 = tpu.matmul %41, %28, %cst_35 {dimension_numbers = #tpu.dot_dimension_numbers<[1], [0], [0], [1], [0, 0, 1, 1], [], []>} : vector<8x8xf32>, vector<8x8xf32>, vector<8x8xf32> -> vector<8x8xf32>
    %c0_36 = arith.constant 0 : index
    %c0_37 = arith.constant 0 : index
    %c0_38 = arith.constant 0 : index
    %43 = vector.load %arg9[%c0_36, %c0_37, %c0_38] : memref<4x8x32xf32, #tpu.memory_space<vmem>>, vector<1x8x32xf32>
    %44 = vector.shape_cast %43 : vector<1x8x32xf32> to vector<8x32xf32>
    %cst_39 = arith.constant dense<0.000000e+00> : vector<8x32xf32>
    %45 = tpu.matmul %42, %44, %cst_39 {dimension_numbers = #tpu.dot_dimension_numbers<[1], [0], [0], [1], [0, 0, 1, 1], [], []>} : vector<8x8xf32>, vector<8x32xf32>, vector<8x32xf32> -> vector<8x32xf32>
    %46 = arith.addf %7, %45 : vector<8x32xf32>
    %c1 = arith.constant 1 : index
    %c0_40 = arith.constant 0 : index
    %c0_41 = arith.constant 0 : index
    %47 = vector.load %arg3[%c1, %c0_40, %c0_41] : memref<4x32x8xf32, #tpu.memory_space<vmem>>, vector<1x32x8xf32>
    %48 = vector.shape_cast %47 : vector<1x32x8xf32> to vector<32x8xf32>
    %cst_42 = arith.constant dense<0.000000e+00> : vector<8x8xf32>
    %49 = tpu.matmul %6, %48, %cst_42 {dimension_numbers = #tpu.dot_dimension_numbers<[1], [0], [0], [1], [0, 0, 1, 1], [], []>} : vector<8x32xf32>, vector<32x8xf32>, vector<8x8xf32> -> vector<8x8xf32>
    %c1_43 = arith.constant 1 : index
    %c0_44 = arith.constant 0 : index
    %c0_45 = arith.constant 0 : index
    %50 = vector.load %arg6[%c1_43, %c0_44, %c0_45] : memref<4x1x8xf32, #tpu.memory_space<vmem>>, vector<1x1x8xf32>
    %51 = vector.shape_cast %50 : vector<1x1x8xf32> to vector<1x8xf32>
    %52 = vector.broadcast %51 : vector<1x8xf32> to vector<8x8xf32>
    %53 = arith.addf %49, %52 : vector<8x8xf32>
    %c1_46 = arith.constant 1 : index
    %c0_47 = arith.constant 0 : index
    %c0_48 = arith.constant 0 : index
    %54 = vector.load %arg4[%c1_46, %c0_47, %c0_48] : memref<4x32x8xf32, #tpu.memory_space<vmem>>, vector<1x32x8xf32>
    %55 = vector.shape_cast %54 : vector<1x32x8xf32> to vector<32x8xf32>
    %cst_49 = arith.constant dense<0.000000e+00> : vector<8x8xf32>
    %56 = tpu.matmul %6, %55, %cst_49 {dimension_numbers = #tpu.dot_dimension_numbers<[1], [0], [0], [1], [0, 0, 1, 1], [], []>} : vector<8x32xf32>, vector<32x8xf32>, vector<8x8xf32> -> vector<8x8xf32>
    %c1_50 = arith.constant 1 : index
    %c0_51 = arith.constant 0 : index
    %c0_52 = arith.constant 0 : index
    %57 = vector.load %arg7[%c1_50, %c0_51, %c0_52] : memref<4x1x8xf32, #tpu.memory_space<vmem>>, vector<1x1x8xf32>
    %58 = vector.shape_cast %57 : vector<1x1x8xf32> to vector<1x8xf32>
    %59 = vector.broadcast %58 : vector<1x8xf32> to vector<8x8xf32>
    %60 = arith.addf %56, %59 : vector<8x8xf32>
    %c1_53 = arith.constant 1 : index
    %c0_54 = arith.constant 0 : index
    %c0_55 = arith.constant 0 : index
    %61 = vector.load %arg5[%c1_53, %c0_54, %c0_55] : memref<4x32x8xf32, #tpu.memory_space<vmem>>, vector<1x32x8xf32>
    %62 = vector.shape_cast %61 : vector<1x32x8xf32> to vector<32x8xf32>
    %cst_56 = arith.constant dense<0.000000e+00> : vector<8x8xf32>
    %63 = tpu.matmul %6, %62, %cst_56 {dimension_numbers = #tpu.dot_dimension_numbers<[1], [0], [0], [1], [0, 0, 1, 1], [], []>} : vector<8x32xf32>, vector<32x8xf32>, vector<8x8xf32> -> vector<8x8xf32>
    %c1_57 = arith.constant 1 : index
    %c0_58 = arith.constant 0 : index
    %c0_59 = arith.constant 0 : index
    %64 = vector.load %arg8[%c1_57, %c0_58, %c0_59] : memref<4x1x8xf32, #tpu.memory_space<vmem>>, vector<1x1x8xf32>
    %65 = vector.shape_cast %64 : vector<1x1x8xf32> to vector<1x8xf32>
    %66 = vector.broadcast %65 : vector<1x8xf32> to vector<8x8xf32>
    %67 = arith.addf %63, %66 : vector<8x8xf32>
    %68 = tpu.transpose %60, [1, 0] : vector<8x8xf32> -> vector<8x8xf32>
    %cst_60 = arith.constant dense<0.000000e+00> : vector<8x8xf32>
    %69 = tpu.matmul %53, %68, %cst_60 {dimension_numbers = #tpu.dot_dimension_numbers<[1], [0], [0], [1], [0, 0, 1, 1], [], []>} : vector<8x8xf32>, vector<8x8xf32>, vector<8x8xf32> -> vector<8x8xf32>
    %cst_61 = arith.constant 0.353553385 : f32
    %70 = vector.broadcast %cst_61 : f32 to vector<8x8xf32>
    %71 = arith.mulf %69, %70 : vector<8x8xf32>
    %cst_62 = arith.constant dense<0xFF800000> : vector<8xf32>
    %72 = vector.multi_reduction <maximumf>, %71, %cst_62 [1] : vector<8x8xf32> to vector<8xf32>
    %73 = vector.shape_cast %72 : vector<8xf32> to vector<8x1xf32>
    %74 = vector.broadcast %73 : vector<8x1xf32> to vector<8x8xf32>
    %75 = arith.subf %71, %74 : vector<8x8xf32>
    %76 = math.exp %75 : vector<8x8xf32>
    %cst_63 = arith.constant dense<0.000000e+00> : vector<8xf32>
    %77 = vector.multi_reduction <add>, %76, %cst_63 [1] : vector<8x8xf32> to vector<8xf32>
    %78 = vector.shape_cast %77 : vector<8xf32> to vector<8x1xf32>
    %79 = vector.broadcast %78 : vector<8x1xf32> to vector<8x8xf32>
    %80 = arith.divf %76, %79 : vector<8x8xf32>
    %cst_64 = arith.constant dense<0.000000e+00> : vector<8x8xf32>
    %81 = tpu.matmul %80, %67, %cst_64 {dimension_numbers = #tpu.dot_dimension_numbers<[1], [0], [0], [1], [0, 0, 1, 1], [], []>} : vector<8x8xf32>, vector<8x8xf32>, vector<8x8xf32> -> vector<8x8xf32>
    %c1_65 = arith.constant 1 : index
    %c0_66 = arith.constant 0 : index
    %c0_67 = arith.constant 0 : index
    %82 = vector.load %arg9[%c1_65, %c0_66, %c0_67] : memref<4x8x32xf32, #tpu.memory_space<vmem>>, vector<1x8x32xf32>
    %83 = vector.shape_cast %82 : vector<1x8x32xf32> to vector<8x32xf32>
    %cst_68 = arith.constant dense<0.000000e+00> : vector<8x32xf32>
    %84 = tpu.matmul %81, %83, %cst_68 {dimension_numbers = #tpu.dot_dimension_numbers<[1], [0], [0], [1], [0, 0, 1, 1], [], []>} : vector<8x8xf32>, vector<8x32xf32>, vector<8x32xf32> -> vector<8x32xf32>
    %85 = arith.addf %46, %84 : vector<8x32xf32>
    %c2 = arith.constant 2 : index
    %c0_69 = arith.constant 0 : index
    %c0_70 = arith.constant 0 : index
    %86 = vector.load %arg3[%c2, %c0_69, %c0_70] : memref<4x32x8xf32, #tpu.memory_space<vmem>>, vector<1x32x8xf32>
    %87 = vector.shape_cast %86 : vector<1x32x8xf32> to vector<32x8xf32>
    %cst_71 = arith.constant dense<0.000000e+00> : vector<8x8xf32>
    %88 = tpu.matmul %6, %87, %cst_71 {dimension_numbers = #tpu.dot_dimension_numbers<[1], [0], [0], [1], [0, 0, 1, 1], [], []>} : vector<8x32xf32>, vector<32x8xf32>, vector<8x8xf32> -> vector<8x8xf32>
    %c2_72 = arith.constant 2 : index
    %c0_73 = arith.constant 0 : index
    %c0_74 = arith.constant 0 : index
    %89 = vector.load %arg6[%c2_72, %c0_73, %c0_74] : memref<4x1x8xf32, #tpu.memory_space<vmem>>, vector<1x1x8xf32>
    %90 = vector.shape_cast %89 : vector<1x1x8xf32> to vector<1x8xf32>
    %91 = vector.broadcast %90 : vector<1x8xf32> to vector<8x8xf32>
    %92 = arith.addf %88, %91 : vector<8x8xf32>
    %c2_75 = arith.constant 2 : index
    %c0_76 = arith.constant 0 : index
    %c0_77 = arith.constant 0 : index
    %93 = vector.load %arg4[%c2_75, %c0_76, %c0_77] : memref<4x32x8xf32, #tpu.memory_space<vmem>>, vector<1x32x8xf32>
    %94 = vector.shape_cast %93 : vector<1x32x8xf32> to vector<32x8xf32>
    %cst_78 = arith.constant dense<0.000000e+00> : vector<8x8xf32>
    %95 = tpu.matmul %6, %94, %cst_78 {dimension_numbers = #tpu.dot_dimension_numbers<[1], [0], [0], [1], [0, 0, 1, 1], [], []>} : vector<8x32xf32>, vector<32x8xf32>, vector<8x8xf32> -> vector<8x8xf32>
    %c2_79 = arith.constant 2 : index
    %c0_80 = arith.constant 0 : index
    %c0_81 = arith.constant 0 : index
    %96 = vector.load %arg7[%c2_79, %c0_80, %c0_81] : memref<4x1x8xf32, #tpu.memory_space<vmem>>, vector<1x1x8xf32>
    %97 = vector.shape_cast %96 : vector<1x1x8xf32> to vector<1x8xf32>
    %98 = vector.broadcast %97 : vector<1x8xf32> to vector<8x8xf32>
    %99 = arith.addf %95, %98 : vector<8x8xf32>
    %c2_82 = arith.constant 2 : index
    %c0_83 = arith.constant 0 : index
    %c0_84 = arith.constant 0 : index
    %100 = vector.load %arg5[%c2_82, %c0_83, %c0_84] : memref<4x32x8xf32, #tpu.memory_space<vmem>>, vector<1x32x8xf32>
    %101 = vector.shape_cast %100 : vector<1x32x8xf32> to vector<32x8xf32>
    %cst_85 = arith.constant dense<0.000000e+00> : vector<8x8xf32>
    %102 = tpu.matmul %6, %101, %cst_85 {dimension_numbers = #tpu.dot_dimension_numbers<[1], [0], [0], [1], [0, 0, 1, 1], [], []>} : vector<8x32xf32>, vector<32x8xf32>, vector<8x8xf32> -> vector<8x8xf32>
    %c2_86 = arith.constant 2 : index
    %c0_87 = arith.constant 0 : index
    %c0_88 = arith.constant 0 : index
    %103 = vector.load %arg8[%c2_86, %c0_87, %c0_88] : memref<4x1x8xf32, #tpu.memory_space<vmem>>, vector<1x1x8xf32>
    %104 = vector.shape_cast %103 : vector<1x1x8xf32> to vector<1x8xf32>
    %105 = vector.broadcast %104 : vector<1x8xf32> to vector<8x8xf32>
    %106 = arith.addf %102, %105 : vector<8x8xf32>
    %107 = tpu.transpose %99, [1, 0] : vector<8x8xf32> -> vector<8x8xf32>
    %cst_89 = arith.constant dense<0.000000e+00> : vector<8x8xf32>
    %108 = tpu.matmul %92, %107, %cst_89 {dimension_numbers = #tpu.dot_dimension_numbers<[1], [0], [0], [1], [0, 0, 1, 1], [], []>} : vector<8x8xf32>, vector<8x8xf32>, vector<8x8xf32> -> vector<8x8xf32>
    %cst_90 = arith.constant 0.353553385 : f32
    %109 = vector.broadcast %cst_90 : f32 to vector<8x8xf32>
    %110 = arith.mulf %108, %109 : vector<8x8xf32>
    %cst_91 = arith.constant dense<0xFF800000> : vector<8xf32>
    %111 = vector.multi_reduction <maximumf>, %110, %cst_91 [1] : vector<8x8xf32> to vector<8xf32>
    %112 = vector.shape_cast %111 : vector<8xf32> to vector<8x1xf32>
    %113 = vector.broadcast %112 : vector<8x1xf32> to vector<8x8xf32>
    %114 = arith.subf %110, %113 : vector<8x8xf32>
    %115 = math.exp %114 : vector<8x8xf32>
    %cst_92 = arith.constant dense<0.000000e+00> : vector<8xf32>
    %116 = vector.multi_reduction <add>, %115, %cst_92 [1] : vector<8x8xf32> to vector<8xf32>
    %117 = vector.shape_cast %116 : vector<8xf32> to vector<8x1xf32>
    %118 = vector.broadcast %117 : vector<8x1xf32> to vector<8x8xf32>
    %119 = arith.divf %115, %118 : vector<8x8xf32>
    %cst_93 = arith.constant dense<0.000000e+00> : vector<8x8xf32>
    %120 = tpu.matmul %119, %106, %cst_93 {dimension_numbers = #tpu.dot_dimension_numbers<[1], [0], [0], [1], [0, 0, 1, 1], [], []>} : vector<8x8xf32>, vector<8x8xf32>, vector<8x8xf32> -> vector<8x8xf32>
    %c2_94 = arith.constant 2 : index
    %c0_95 = arith.constant 0 : index
    %c0_96 = arith.constant 0 : index
    %121 = vector.load %arg9[%c2_94, %c0_95, %c0_96] : memref<4x8x32xf32, #tpu.memory_space<vmem>>, vector<1x8x32xf32>
    %122 = vector.shape_cast %121 : vector<1x8x32xf32> to vector<8x32xf32>
    %cst_97 = arith.constant dense<0.000000e+00> : vector<8x32xf32>
    %123 = tpu.matmul %120, %122, %cst_97 {dimension_numbers = #tpu.dot_dimension_numbers<[1], [0], [0], [1], [0, 0, 1, 1], [], []>} : vector<8x8xf32>, vector<8x32xf32>, vector<8x32xf32> -> vector<8x32xf32>
    %124 = arith.addf %85, %123 : vector<8x32xf32>
    %c3 = arith.constant 3 : index
    %c0_98 = arith.constant 0 : index
    %c0_99 = arith.constant 0 : index
    %125 = vector.load %arg3[%c3, %c0_98, %c0_99] : memref<4x32x8xf32, #tpu.memory_space<vmem>>, vector<1x32x8xf32>
    %126 = vector.shape_cast %125 : vector<1x32x8xf32> to vector<32x8xf32>
    %cst_100 = arith.constant dense<0.000000e+00> : vector<8x8xf32>
    %127 = tpu.matmul %6, %126, %cst_100 {dimension_numbers = #tpu.dot_dimension_numbers<[1], [0], [0], [1], [0, 0, 1, 1], [], []>} : vector<8x32xf32>, vector<32x8xf32>, vector<8x8xf32> -> vector<8x8xf32>
    %c3_101 = arith.constant 3 : index
    %c0_102 = arith.constant 0 : index
    %c0_103 = arith.constant 0 : index
    %128 = vector.load %arg6[%c3_101, %c0_102, %c0_103] : memref<4x1x8xf32, #tpu.memory_space<vmem>>, vector<1x1x8xf32>
    %129 = vector.shape_cast %128 : vector<1x1x8xf32> to vector<1x8xf32>
    %130 = vector.broadcast %129 : vector<1x8xf32> to vector<8x8xf32>
    %131 = arith.addf %127, %130 : vector<8x8xf32>
    %c3_104 = arith.constant 3 : index
    %c0_105 = arith.constant 0 : index
    %c0_106 = arith.constant 0 : index
    %132 = vector.load %arg4[%c3_104, %c0_105, %c0_106] : memref<4x32x8xf32, #tpu.memory_space<vmem>>, vector<1x32x8xf32>
    %133 = vector.shape_cast %132 : vector<1x32x8xf32> to vector<32x8xf32>
    %cst_107 = arith.constant dense<0.000000e+00> : vector<8x8xf32>
    %134 = tpu.matmul %6, %133, %cst_107 {dimension_numbers = #tpu.dot_dimension_numbers<[1], [0], [0], [1], [0, 0, 1, 1], [], []>} : vector<8x32xf32>, vector<32x8xf32>, vector<8x8xf32> -> vector<8x8xf32>
    %c3_108 = arith.constant 3 : index
    %c0_109 = arith.constant 0 : index
    %c0_110 = arith.constant 0 : index
    %135 = vector.load %arg7[%c3_108, %c0_109, %c0_110] : memref<4x1x8xf32, #tpu.memory_space<vmem>>, vector<1x1x8xf32>
    %136 = vector.shape_cast %135 : vector<1x1x8xf32> to vector<1x8xf32>
    %137 = vector.broadcast %136 : vector<1x8xf32> to vector<8x8xf32>
    %138 = arith.addf %134, %137 : vector<8x8xf32>
    %c3_111 = arith.constant 3 : index
    %c0_112 = arith.constant 0 : index
    %c0_113 = arith.constant 0 : index
    %139 = vector.load %arg5[%c3_111, %c0_112, %c0_113] : memref<4x32x8xf32, #tpu.memory_space<vmem>>, vector<1x32x8xf32>
    %140 = vector.shape_cast %139 : vector<1x32x8xf32> to vector<32x8xf32>
    %cst_114 = arith.constant dense<0.000000e+00> : vector<8x8xf32>
    %141 = tpu.matmul %6, %140, %cst_114 {dimension_numbers = #tpu.dot_dimension_numbers<[1], [0], [0], [1], [0, 0, 1, 1], [], []>} : vector<8x32xf32>, vector<32x8xf32>, vector<8x8xf32> -> vector<8x8xf32>
    %c3_115 = arith.constant 3 : index
    %c0_116 = arith.constant 0 : index
    %c0_117 = arith.constant 0 : index
    %142 = vector.load %arg8[%c3_115, %c0_116, %c0_117] : memref<4x1x8xf32, #tpu.memory_space<vmem>>, vector<1x1x8xf32>
    %143 = vector.shape_cast %142 : vector<1x1x8xf32> to vector<1x8xf32>
    %144 = vector.broadcast %143 : vector<1x8xf32> to vector<8x8xf32>
    %145 = arith.addf %141, %144 : vector<8x8xf32>
    %146 = tpu.transpose %138, [1, 0] : vector<8x8xf32> -> vector<8x8xf32>
    %cst_118 = arith.constant dense<0.000000e+00> : vector<8x8xf32>
    %147 = tpu.matmul %131, %146, %cst_118 {dimension_numbers = #tpu.dot_dimension_numbers<[1], [0], [0], [1], [0, 0, 1, 1], [], []>} : vector<8x8xf32>, vector<8x8xf32>, vector<8x8xf32> -> vector<8x8xf32>
    %cst_119 = arith.constant 0.353553385 : f32
    %148 = vector.broadcast %cst_119 : f32 to vector<8x8xf32>
    %149 = arith.mulf %147, %148 : vector<8x8xf32>
    %cst_120 = arith.constant dense<0xFF800000> : vector<8xf32>
    %150 = vector.multi_reduction <maximumf>, %149, %cst_120 [1] : vector<8x8xf32> to vector<8xf32>
    %151 = vector.shape_cast %150 : vector<8xf32> to vector<8x1xf32>
    %152 = vector.broadcast %151 : vector<8x1xf32> to vector<8x8xf32>
    %153 = arith.subf %149, %152 : vector<8x8xf32>
    %154 = math.exp %153 : vector<8x8xf32>
    %cst_121 = arith.constant dense<0.000000e+00> : vector<8xf32>
    %155 = vector.multi_reduction <add>, %154, %cst_121 [1] : vector<8x8xf32> to vector<8xf32>
    %156 = vector.shape_cast %155 : vector<8xf32> to vector<8x1xf32>
    %157 = vector.broadcast %156 : vector<8x1xf32> to vector<8x8xf32>
    %158 = arith.divf %154, %157 : vector<8x8xf32>
    %cst_122 = arith.constant dense<0.000000e+00> : vector<8x8xf32>
    %159 = tpu.matmul %158, %145, %cst_122 {dimension_numbers = #tpu.dot_dimension_numbers<[1], [0], [0], [1], [0, 0, 1, 1], [], []>} : vector<8x8xf32>, vector<8x8xf32>, vector<8x8xf32> -> vector<8x8xf32>
    %c3_123 = arith.constant 3 : index
    %c0_124 = arith.constant 0 : index
    %c0_125 = arith.constant 0 : index
    %160 = vector.load %arg9[%c3_123, %c0_124, %c0_125] : memref<4x8x32xf32, #tpu.memory_space<vmem>>, vector<1x8x32xf32>
    %161 = vector.shape_cast %160 : vector<1x8x32xf32> to vector<8x32xf32>
    %cst_126 = arith.constant dense<0.000000e+00> : vector<8x32xf32>
    %162 = tpu.matmul %159, %161, %cst_126 {dimension_numbers = #tpu.dot_dimension_numbers<[1], [0], [0], [1], [0, 0, 1, 1], [], []>} : vector<8x8xf32>, vector<8x32xf32>, vector<8x32xf32> -> vector<8x32xf32>
    %163 = arith.addf %124, %162 : vector<8x32xf32>
    %c0_127 = arith.constant 0 : index
    %c0_128 = arith.constant 0 : index
    %164 = vector.load %arg10[%c0_127, %c0_128] : memref<1x32xf32, #tpu.memory_space<vmem>>, vector<1x32xf32>
    %165 = vector.broadcast %164 : vector<1x32xf32> to vector<8x32xf32>
    %166 = arith.addf %163, %165 : vector<8x32xf32>
    %167 = arith.addf %6, %166 : vector<8x32xf32>
    %c0_129 = arith.constant 0 : index
    %c0_130 = arith.constant 0 : index
    %168 = vector.load %arg11[%c0_129, %c0_130] : memref<1x32xf32, #tpu.memory_space<vmem>>, vector<1x32xf32>
    %c0_131 = arith.constant 0 : index
    %c0_132 = arith.constant 0 : index
    %169 = vector.load %arg12[%c0_131, %c0_132] : memref<1x32xf32, #tpu.memory_space<vmem>>, vector<1x32xf32>
    %cst_133 = arith.constant dense<0.000000e+00> : vector<8xf32>
    %170 = vector.multi_reduction <add>, %167, %cst_133 [1] : vector<8x32xf32> to vector<8xf32>
    %171 = vector.shape_cast %170 : vector<8xf32> to vector<8x1xf32>
    %cst_134 = arith.constant 3.200000e+01 : f32
    %172 = vector.broadcast %cst_134 : f32 to vector<8x1xf32>
    %173 = arith.divf %171, %172 : vector<8x1xf32>
    %174 = vector.broadcast %173 : vector<8x1xf32> to vector<8x32xf32>
    %175 = arith.subf %167, %174 : vector<8x32xf32>
    %176 = arith.mulf %175, %175 : vector<8x32xf32>
    %cst_135 = arith.constant dense<0.000000e+00> : vector<8xf32>
    %177 = vector.multi_reduction <add>, %176, %cst_135 [1] : vector<8x32xf32> to vector<8xf32>
    %178 = vector.shape_cast %177 : vector<8xf32> to vector<8x1xf32>
    %cst_136 = arith.constant 3.200000e+01 : f32
    %179 = vector.broadcast %cst_136 : f32 to vector<8x1xf32>
    %180 = arith.divf %178, %179 : vector<8x1xf32>
    %181 = vector.broadcast %173 : vector<8x1xf32> to vector<8x32xf32>
    %182 = arith.subf %167, %181 : vector<8x32xf32>
    %cst_137 = arith.constant 9.99999974E-6 : f32
    %183 = vector.broadcast %cst_137 : f32 to vector<8x1xf32>
    %184 = arith.addf %180, %183 : vector<8x1xf32>
    %185 = math.rsqrt %184 : vector<8x1xf32>
    %186 = vector.broadcast %185 : vector<8x1xf32> to vector<8x32xf32>
    %187 = arith.mulf %182, %186 : vector<8x32xf32>
    %188 = vector.broadcast %168 : vector<1x32xf32> to vector<8x32xf32>
    %189 = arith.mulf %187, %188 : vector<8x32xf32>
    %190 = vector.broadcast %169 : vector<1x32xf32> to vector<8x32xf32>
    %191 = arith.addf %189, %190 : vector<8x32xf32>
    %c0_138 = arith.constant 0 : index
    %c0_139 = arith.constant 0 : index
    %192 = vector.load %arg13[%c0_138, %c0_139] : memref<32x128xf32, #tpu.memory_space<vmem>>, vector<32x128xf32>
    %cst_140 = arith.constant dense<0.000000e+00> : vector<8x128xf32>
    %193 = tpu.matmul %191, %192, %cst_140 {dimension_numbers = #tpu.dot_dimension_numbers<[1], [0], [0], [1], [0, 0, 1, 1], [], []>} : vector<8x32xf32>, vector<32x128xf32>, vector<8x128xf32> -> vector<8x128xf32>
    %c0_141 = arith.constant 0 : index
    %c0_142 = arith.constant 0 : index
    %194 = vector.load %arg14[%c0_141, %c0_142] : memref<1x128xf32, #tpu.memory_space<vmem>>, vector<1x128xf32>
    %195 = vector.broadcast %194 : vector<1x128xf32> to vector<8x128xf32>
    %196 = arith.addf %193, %195 : vector<8x128xf32>
    %cst_143 = arith.constant 0.000000e+00 : f32
    %197 = vector.broadcast %cst_143 : f32 to vector<8x128xf32>
    %198 = arith.maximumf %196, %197 : vector<8x128xf32>
    %c0_144 = arith.constant 0 : index
    %c0_145 = arith.constant 0 : index
    %199 = vector.load %arg15[%c0_144, %c0_145] : memref<128x32xf32, #tpu.memory_space<vmem>>, vector<128x32xf32>
    %cst_146 = arith.constant dense<0.000000e+00> : vector<8x32xf32>
    %200 = tpu.matmul %198, %199, %cst_146 {dimension_numbers = #tpu.dot_dimension_numbers<[1], [0], [0], [1], [0, 0, 1, 1], [], []>} : vector<8x128xf32>, vector<128x32xf32>, vector<8x32xf32> -> vector<8x32xf32>
    %c0_147 = arith.constant 0 : index
    %c0_148 = arith.constant 0 : index
    %201 = vector.load %arg16[%c0_147, %c0_148] : memref<1x32xf32, #tpu.memory_space<vmem>>, vector<1x32xf32>
    %202 = vector.broadcast %201 : vector<1x32xf32> to vector<8x32xf32>
    %203 = arith.addf %200, %202 : vector<8x32xf32>
    %204 = arith.addf %191, %203 : vector<8x32xf32>
    %c0_149 = arith.constant 0 : index
    %c0_150 = arith.constant 0 : index
    %205 = vector.load %arg17[%c0_149, %c0_150] : memref<1x32xf32, #tpu.memory_space<vmem>>, vector<1x32xf32>
    %c0_151 = arith.constant 0 : index
    %c0_152 = arith.constant 0 : index
    %206 = vector.load %arg18[%c0_151, %c0_152] : memref<1x32xf32, #tpu.memory_space<vmem>>, vector<1x32xf32>
    %cst_153 = arith.constant dense<0.000000e+00> : vector<8xf32>
    %207 = vector.multi_reduction <add>, %204, %cst_153 [1] : vector<8x32xf32> to vector<8xf32>
    %208 = vector.shape_cast %207 : vector<8xf32> to vector<8x1xf32>
    %cst_154 = arith.constant 3.200000e+01 : f32
    %209 = vector.broadcast %cst_154 : f32 to vector<8x1xf32>
    %210 = arith.divf %208, %209 : vector<8x1xf32>
    %211 = vector.broadcast %210 : vector<8x1xf32> to vector<8x32xf32>
    %212 = arith.subf %204, %211 : vector<8x32xf32>
    %213 = arith.mulf %212, %212 : vector<8x32xf32>
    %cst_155 = arith.constant dense<0.000000e+00> : vector<8xf32>
    %214 = vector.multi_reduction <add>, %213, %cst_155 [1] : vector<8x32xf32> to vector<8xf32>
    %215 = vector.shape_cast %214 : vector<8xf32> to vector<8x1xf32>
    %cst_156 = arith.constant 3.200000e+01 : f32
    %216 = vector.broadcast %cst_156 : f32 to vector<8x1xf32>
    %217 = arith.divf %215, %216 : vector<8x1xf32>
    %218 = vector.broadcast %210 : vector<8x1xf32> to vector<8x32xf32>
    %219 = arith.subf %204, %218 : vector<8x32xf32>
    %cst_157 = arith.constant 9.99999974E-6 : f32
    %220 = vector.broadcast %cst_157 : f32 to vector<8x1xf32>
    %221 = arith.addf %217, %220 : vector<8x1xf32>
    %222 = math.rsqrt %221 : vector<8x1xf32>
    %223 = vector.broadcast %222 : vector<8x1xf32> to vector<8x32xf32>
    %224 = arith.mulf %219, %223 : vector<8x32xf32>
    %225 = vector.broadcast %205 : vector<1x32xf32> to vector<8x32xf32>
    %226 = arith.mulf %224, %225 : vector<8x32xf32>
    %227 = vector.broadcast %206 : vector<1x32xf32> to vector<8x32xf32>
    %228 = arith.addf %226, %227 : vector<8x32xf32>
    %c0_158 = arith.constant 0 : index
    %c0_159 = arith.constant 0 : index
    %229 = vector.load %arg21[%c0_158, %c0_159] : memref<8x32xf32, #tpu.memory_space<vmem>>, vector<8x32xf32>
    tpu.vector_store %arg21[%c0_158, %c0_159], %228 {strides = array<i32>} : memref<8x32xf32, #tpu.memory_space<vmem>>, vector<8x32xf32>,
    %c0_160 = arith.constant 0 : index
    %c0_161 = arith.constant 0 : index
    %230 = vector.load %arg21[%c0_160, %c0_161] : memref<8x32xf32, #tpu.memory_space<vmem>>, vector<4x32xf32>
    %c0_162 = arith.constant 0 : index
    %c0_163 = arith.constant 0 : index
    %c0_164 = arith.constant 0 : index
    %231 = vector.load %arg19[%c0_162, %c0_163, %c0_164] : memref<1x4x32xf32, #tpu.memory_space<vmem>>, vector<1x4x32xf32>
    %232 = vector.shape_cast %231 : vector<1x4x32xf32> to vector<4x32xf32>
    %233 = vector.shape_cast %230 : vector<4x32xf32> to vector<1x4x32xf32>
    tpu.vector_store %arg19[%c0_162, %c0_163, %c0_164], %233 {strides = array<i32>} : memref<1x4x32xf32, #tpu.memory_space<vmem>>, vector<1x4x32xf32>,
    %c4_165 = arith.constant 4 : index
    %c0_166 = arith.constant 0 : index
    %234 = vector.load %arg21[%c4_165, %c0_166] : memref<8x32xf32, #tpu.memory_space<vmem>>, vector<4x32xf32>
    %c0_167 = arith.constant 0 : index
    %c0_168 = arith.constant 0 : index
    %c0_169 = arith.constant 0 : index
    %235 = vector.load %arg20[%c0_167, %c0_168, %c0_169] : memref<1x4x32xf32, #tpu.memory_space<vmem>>, vector<1x4x32xf32>
    %236 = vector.shape_cast %235 : vector<1x4x32xf32> to vector<4x32xf32>
    %237 = vector.shape_cast %234 : vector<4x32xf32> to vector<1x4x32xf32>
    tpu.vector_store %arg20[%c0_167, %c0_168, %c0_169], %237 {strides = array<i32>} : memref<1x4x32xf32, #tpu.memory_space<vmem>>, vector<1x4x32xf32>,
    return
  }
  func.func @transform_0(%arg0: i32) -> (i32, i32, i32) {
    %c0_i32 = arith.constant 0 : i32
    %c0_i32_0 = arith.constant 0 : i32
    %c0_i32_1 = arith.constant 0 : i32
    return %arg0, %c0_i32, %c0_i32_0 : i32, i32, i32
  }
  func.func @transform_1(%arg0: i32) -> (i32, i32, i32) {
    %c0_i32 = arith.constant 0 : i32
    %c0_i32_0 = arith.constant 0 : i32
    %c0_i32_1 = arith.constant 0 : i32
    return %arg0, %c0_i32, %c0_i32_0 : i32, i32, i32
  }
  func.func @transform_2(%arg0: i32) -> (i32, i32, i32) {
    %c0_i32 = arith.constant 0 : i32
    %c0_i32_0 = arith.constant 0 : i32
    %c0_i32_1 = arith.constant 0 : i32
    %c0_i32_2 = arith.constant 0 : i32
    return %c0_i32, %c0_i32_0, %c0_i32_1 : i32, i32, i32
  }
  func.func @transform_3(%arg0: i32) -> (i32, i32, i32) {
    %c0_i32 = arith.constant 0 : i32
    %c0_i32_0 = arith.constant 0 : i32
    %c0_i32_1 = arith.constant 0 : i32
    %c0_i32_2 = arith.constant 0 : i32
    return %c0_i32, %c0_i32_0, %c0_i32_1 : i32, i32, i32
  }
  func.func @transform_4(%arg0: i32) -> (i32, i32, i32) {
    %c0_i32 = arith.constant 0 : i32
    %c0_i32_0 = arith.constant 0 : i32
    %c0_i32_1 = arith.constant 0 : i32
    %c0_i32_2 = arith.constant 0 : i32
    return %c0_i32, %c0_i32_0, %c0_i32_1 : i32, i32, i32
  }
  func.func @transform_5(%arg0: i32) -> (i32, i32, i32) {
    %c0_i32 = arith.constant 0 : i32
    %c0_i32_0 = arith.constant 0 : i32
    %c0_i32_1 = arith.constant 0 : i32
    %c0_i32_2 = arith.constant 0 : i32
    return %c0_i32, %c0_i32_0, %c0_i32_1 : i32, i32, i32
  }
  func.func @transform_6(%arg0: i32) -> (i32, i32, i32) {
    %c0_i32 = arith.constant 0 : i32
    %c0_i32_0 = arith.constant 0 : i32
    %c0_i32_1 = arith.constant 0 : i32
    %c0_i32_2 = arith.constant 0 : i32
    return %c0_i32, %c0_i32_0, %c0_i32_1 : i32, i32, i32
  }
  func.func @transform_7(%arg0: i32) -> (i32, i32, i32) {
    %c0_i32 = arith.constant 0 : i32
    %c0_i32_0 = arith.constant 0 : i32
    %c0_i32_1 = arith.constant 0 : i32
    %c0_i32_2 = arith.constant 0 : i32
    return %c0_i32, %c0_i32_0, %c0_i32_1 : i32, i32, i32
  }
  func.func @transform_8(%arg0: i32) -> (i32, i32, i32) {
    %c0_i32 = arith.constant 0 : i32
    %c0_i32_0 = arith.constant 0 : i32
    %c0_i32_1 = arith.constant 0 : i32
    %c0_i32_2 = arith.constant 0 : i32
    return %c0_i32, %c0_i32_0, %c0_i32_1 : i32, i32, i32
  }
  func.func @transform_9(%arg0: i32) -> (i32, i32) {
    %c0_i32 = arith.constant 0 : i32
    %c0_i32_0 = arith.constant 0 : i32
    %c0_i32_1 = arith.constant 0 : i32
    return %c0_i32, %c0_i32_0 : i32, i32
  }
  func.func @transform_10(%arg0: i32) -> (i32, i32) {
    %c0_i32 = arith.constant 0 : i32
    %c0_i32_0 = arith.constant 0 : i32
    %c0_i32_1 = arith.constant 0 : i32
    return %c0_i32, %c0_i32_0 : i32, i32
  }
  func.func @transform_11(%arg0: i32) -> (i32, i32) {
    %c0_i32 = arith.constant 0 : i32
    %c0_i32_0 = arith.constant 0 : i32
    %c0_i32_1 = arith.constant 0 : i32
    return %c0_i32, %c0_i32_0 : i32, i32
  }
  func.func @transform_12(%arg0: i32) -> (i32, i32) {
    %c0_i32 = arith.constant 0 : i32
    %c0_i32_0 = arith.constant 0 : i32
    %c0_i32_1 = arith.constant 0 : i32
    return %c0_i32, %c0_i32_0 : i32, i32
  }
  func.func @transform_13(%arg0: i32) -> (i32, i32) {
    %c0_i32 = arith.constant 0 : i32
    %c0_i32_0 = arith.constant 0 : i32
    %c0_i32_1 = arith.constant 0 : i32
    return %c0_i32, %c0_i32_0 : i32, i32
  }
  func.func @transform_14(%arg0: i32) -> (i32, i32) {
    %c0_i32 = arith.constant 0 : i32
    %c0_i32_0 = arith.constant 0 : i32
    %c0_i32_1 = arith.constant 0 : i32
    return %c0_i32, %c0_i32_0 : i32, i32
  }
  func.func @transform_15(%arg0: i32) -> (i32, i32) {
    %c0_i32 = arith.constant 0 : i32
    %c0_i32_0 = arith.constant 0 : i32
    %c0_i32_1 = arith.constant 0 : i32
    return %c0_i32, %c0_i32_0 : i32, i32
  }
  func.func @transform_16(%arg0: i32) -> (i32, i32) {
    %c0_i32 = arith.constant 0 : i32
    %c0_i32_0 = arith.constant 0 : i32
    %c0_i32_1 = arith.constant 0 : i32
    return %c0_i32, %c0_i32_0 : i32, i32
  }
  func.func @transform_17(%arg0: i32) -> (i32, i32) {
    %c0_i32 = arith.constant 0 : i32
    %c0_i32_0 = arith.constant 0 : i32
    %c0_i32_1 = arith.constant 0 : i32
    return %c0_i32, %c0_i32_0 : i32, i32
  }
  func.func @transform_18(%arg0: i32) -> (i32, i32, i32) {
    %c0_i32 = arith.constant 0 : i32
    %c0_i32_0 = arith.constant 0 : i32
    %c0_i32_1 = arith.constant 0 : i32
    return %arg0, %c0_i32, %c0_i32_0 : i32, i32, i32
  }
  func.func @transform_19(%arg0: i32) -> (i32, i32, i32) {
    %c0_i32 = arith.constant 0 : i32
    %c0_i32_0 = arith.constant 0 : i32
    %c0_i32_1 = arith.constant 0 : i32
    return %arg0, %c0_i32, %c0_i32_0 : i32, i32, i32
  }
}

</mosaic_0001>

<bundles_post_ra>
// kernel: tpu_custom_call.1
= control target key start
LH: loop header
LB: loop body
LE: loop exit
PB: predicated region body
PF: predicated region fallthrough
CT: control target
= control target key end

     0   :  { %s2512_s0 = inlined_call_operand.vmem [shape: f32[2,4,32], index: 0, kind: input, shape index: {}]   ;;  %s2513_s1 = inlined_call_operand.vmem [shape: f32[2,4,32], index: 1, kind: input, shape index: {}]   ;;  %s2514_s2 = inlined_call_operand.vmem [shape: f32[4,32,8], index: 2, kind: input, shape index: {}]   ;;  %s2515_s3 = inlined_call_operand.vmem [shape: f32[4,32,8], index: 3, kind: input, shape index: {}]   ;;  %s2516_s4 = inlined_call_operand.vmem [shape: f32[4,32,8], index: 4, kind: input, shape index: {}]   ;;  %s2517_s5 = inlined_call_operand.vmem [shape: f32[4,1,8], index: 5, kind: input, shape index: {}]   ;;  %s2518_s6 = inlined_call_operand.vmem [shape: f32[4,1,8], index: 6, kind: input, shape index: {}]   ;;  %s2519_s7 = inlined_call_operand.vmem [shape: f32[4,1,8], index: 7, kind: input, shape index: {}]   ;;  %s2520_s8 = inlined_call_operand.vmem [shape: f32[4,8,32], index: 8, kind: input, shape index: {}]   ;;  %s2521_s9 = inlined_call_operand.vmem [shape: f32[1,32], index: 9, kind: input, shape index: {}]   ;;  %s2522_s10 = inlined_call_operand.vmem [shape: f32[1,32], index: 10, kind: input, shape index: {}]   ;;  %s2523_s11 = inlined_call_operand.vmem [shape: f32[1,32], index: 11, kind: input, shape index: {}]   ;;  %s2524_s12 = inlined_call_operand.vmem [shape: f32[32,128], index: 12, kind: input, shape index: {}]   ;;  %s2525_s13 = inlined_call_operand.vmem [shape: f32[1,128], index: 13, kind: input, shape index: {}]   ;;  %s2526_s14 = inlined_call_operand.vmem [shape: f32[128,32], index: 14, kind: input, shape index: {}]   ;;  %s2527_s15 = inlined_call_operand.vmem [shape: f32[1,32], index: 15, kind: input, shape index: {}]   ;;  %s2528_s16 = inlined_call_operand.vmem [shape: f32[1,32], index: 16, kind: input, shape index: {}]   ;;  %s2529_s17 = inlined_call_operand.vmem [shape: f32[1,32], index: 17, kind: input, shape index: {}]   ;;  %s2530_s18 = inlined_call_operand.hbm [shape: f32[2,4,32], index: 18, kind: output, shape index: {0}]   ;;  %s2531_s19 = inlined_call_operand.hbm [shape: f32[2,4,32], index: 19, kind: output, shape index: {1}]  }
   0x1   :  { %2547 = sst [smem:[#allocation18_spill]] %s2512_s0 }
   0x2   :  { %2548 = sst [smem:[#allocation19_spill]] %s2513_s1 }
   0x3   :  { %2549 = sst [smem:[#allocation20_spill]] %s2514_s2 }
   0x4   :  { %2550 = sst [smem:[#allocation21_spill]] %s2515_s3 }
   0x5   :  { %2551 = sst [smem:[#allocation22_spill]] %s2516_s4 }
   0x6   :  { %2552 = sst [smem:[#allocation23_spill]] %s2528_s16 }
   0x7   :  { %2553 = sst [smem:[#allocation24_spill]] %s2529_s17 }
   0x8   :  { %2554 = sst [smem:[#allocation25_spill]] %s2530_s18 }
   0x9   :  { %2555 = sst [smem:[#allocation26_spill]] %s2531_s19 }
   0xa   :  { %25 = vsyncpa [#allocation4], 0 }
   0xb   :  { %27 = vsyncpa [#allocation4 + $0x1], 0 }
   0xc   :  { %28 = vsyncpa [#allocation6], 0 }
   0xd   :  { %30 = vsyncpa [#allocation6 + $0x1], 0  ;;  %s2056_s0 = smov 0   ;;  %s2058_s30 = smov 0  }
   0xe   :  { %s2060_s20 = smov 0   ;;  %s2062_s21 = smov 0  }
   0xf LB: > { %2556 = sst [smem:[#allocation9_spill]] %s1941_s0  ;;  %s2077_s1 = sadd.s32 4294967295, %s1953_s21   ;;  %s1953_s21 = sphi %s2062_s21, %s2583_s21   ;;  %s1949_s20 = sphi %s2060_s20, %s2586_s20   ;;  %s1945_s30 = sphi %s2058_s30, %s2585_s30   ;;  %s1941_s0 = sphi %s2056_s0, %s2584_s0  }
  0x10   : > { %2557 = sst [smem:[#allocation10_spill]] %s1945_s30  ;;  %s1682_s22 = sadd.s32 4294967294, %s1953_s21  }
  0x11   : > { %2558 = sst [smem:[#allocation11_spill]] %s1949_s20  ;;  %s2081_s2 = sadd.s32 1, %s1953_s21  }
  0x12   : > { %2559 = sst [smem:[#allocation12_spill]] %s1953_s21  ;;  %s431_s23 = sadd.s32 1, %s1949_s20 }
  0x13   : > { %2560 = sst [smem:[#allocation13_spill]] %s2077_s1  ;;  %s428_s24 = ssub.s32 %s1953_s21, %s2081_s2 }
  0x14   : > { %2561 = sst [smem:[#allocation14_spill]] %s2081_s2  ;;  %p441_p0 = scmp.ne.s32.totalorder %s1949_s20, %s1945_s30 }
  0x15   : > { %p429_p1 = scmp.eq.s32.totalorder %s428_s24, 0  ;;  %p442_p2 = scmp.eq.s32.totalorder %s2077_s1, 1 }
  0x16   : > { %p447_p3 = scmp.ne.s32.totalorder %s1945_s30, %s1941_s0  ;;  %p448_p4 = scmp.eq.s32.totalorder %s1682_s22, 1 }
  0x17   : > { %s2092_s25 = scalar_select %p429_p1, %s1949_s20, %s431_s23  }
  0x18   : > { %p2094_p5 = por %p442_p2, %p441_p0  ;;  %p2098_p6 = por %p448_p4, %p447_p3 }
  0x19   : > { %2562 = sst [smem:[#allocation15_spill]] %s2092_s25  ;;  %p1685_p7 = scmp.ge.s32.totalorder %s1953_s21, 1 }
  0x1a   : > { %s2563_s3 = scalar_select %p2094_p5, 1, 0 }
  0x1b   : > { %s2565_s26 = scalar_select %p2098_p6, 1, 0 }
  0x1c   : > { %2564 = sst [smem:[#allocation16_spill]] %s2563_s3  ;;  %p554_p8 = scmp.lt.s32.totalorder %s1953_s21, 3 }
  0x1d   : > { %2566 = sst [smem:[#allocation17_spill]] %s2565_s26 }
  0x1e   : > { %p555_p9 = pnand %p1685_p7, %p554_p8 }
  0x1f   : > { %s2567_s29 = sld [smem:[#allocation20_spill]] (!%p555_p9)  ;;  %p618_p10 = scmp.lt.s32.totalorder (!%p555_p9), %s2077_s1, 1 }
  0x20   : > { %558 = sbr.rel (%p555_p9) target bundleno = 3152 (0xc50), region = 92  ;;  %s2568_s21 = sld [smem:[#allocation21_spill]] (!%p555_p9) }
  0x21   : > { %s2570_s19 = sld [smem:[#allocation18_spill]] (!%p555_p9) }
  0x22   : > { %s2571_s24 = sld [smem:[#allocation19_spill]] (!%p555_p9) }
  0x23   : > { %s2572_s4 = sld [smem:[#allocation22_spill]] (!%p555_p9) }
  0x24   : > { %s2573_s22 = sld [smem:[#allocation10_spill]] (!%p555_p9) }
  0x25   : > { %v635_v0 = vld [vmem:[%s2567_s29 + $0x18] sm:$0xff]  ;;  %v634_v1 = vld [vmem:[%s2567_s29 + $0x10] sm:$0xff]  ;;  %v633_v2 = vld [vmem:[%s2567_s29 + $0x8] sm:$0xff]  ;;  %s619_s20 = scalar_select %p618_p10, %s2077_s1, 1  ;;  %vm627_vm0 = vcmask 257024   ;;  %vm640_vm1 = vcmask 261120  }
  0x26   : > { %656 = vmatpush.msra.mxu1 %v635_v0  ;;  %v632_v3 = vld [vmem:[%s2567_s29] sm:$0xff]  ;;  %s2569_s3 = smov %s2568_s21  ;;  %v667_v4 = vld [vmem:[%s2568_s21 + $0x18] sm:$0xff]  ;;  %vm720_vm2 = vcmask 64512   ;;  %v1698_v25 = vld [vmem:[%s2567_s29 + $0x30] sm:$0xff]  ;;  %s2574_s23 = sld [smem:[#allocation13_spill]] }
  0x27   : > { %s1688_s27 = sshll.u32 %s619_s20, 2  ;;  %v666_v5 = vld [vmem:[%s2569_s3 + $0x10] sm:$0xff]  ;;  %v665_v8 = vld [vmem:[%s2569_s3 + $0x8] sm:$0xff]  ;;  %v664_v9 = vld [vmem:[%s2569_s3] sm:$0xff]  ;;  %s2575_s0 = sld [smem:[#allocation23_spill]] }
  0x28   : > { %657 = vmatpush.msra.mxu1 %v634_v1  ;;  %s621_s18 = scalar_lea.vmem %s2570_s19, %s1688_s27  ;;  %s625_s16 = scalar_lea.vmem %s2571_s24, %s1688_s27  ;;  %v1819_v12 = vld [vmem:[%s2518_s6] ss:$0 sm:$0xff]  ;;  %v1699_v24 = vld [vmem:[%s2567_s29 + $0x38] sm:$0xff]  ;;  %v1704_v27 = vld [vmem:[%s2569_s3 + $0x30] sm:$0xff] }
  0x29   : > { %v626_v6 = vld [vmem:[%s621_s18] sm:$0xf]  ;;  %v695_v20 = vld [vmem:[%s2572_s4 + $0x18] sm:$0xff]  ;;  %v694_v21 = vld [vmem:[%s2572_s4 + $0x10] sm:$0xff]  ;;  %s2577_s2 = sld [smem:[#allocation25_spill]] }
  0x2a   : > { %658 = vmatpush.msra.mxu1 %v633_v2  ;;  %v629_v7 = vld [vmem:[%s625_s16] sm:$0xf]  ;;  %628 = vst.msk [vmem:[#allocation2] sm:$0xf] %vm627_vm0, %v626_v6  ;;  %712 = vmatpush.msra.mxu2 %v695_v20  ;;  %v693_v22 = vld [vmem:[%s2572_s4 + $0x8] sm:$0xff]  ;;  %v1705_v26 = vld [vmem:[%s2569_s3 + $0x38] sm:$0xff] }
  0x2b   : > { %630 = vst.msk [vmem:[#allocation2 + $0x4] sm:$0xf] %vm627_vm0, %v629_v7  ;;  %v1818_v13 = vld [vmem:[%s2517_s5] ss:$0 sm:$0xff]  ;;  %v1697_v28 = vld [vmem:[%s2567_s29 + $0x28] sm:$0xff]  ;;  %v1711_v43 = vld [vmem:[%s2572_s4 + $0x38] sm:$0xff] }
  0x2c   : > { %659 = vmatpush.msra.mxu1 %v632_v3  ;;  %713 = vmatpush.msra.mxu2 %v694_v21  ;;  %v692_v23 = vld [vmem:[%s2572_s4] sm:$0xff]  ;;  %v1703_v29 = vld [vmem:[%s2569_s3 + $0x28] sm:$0xff]  ;;  %v1710_v44 = vld [vmem:[%s2572_s4 + $0x30] sm:$0xff]  ;;  %s2450_s20 = sand.u32 1, %s2573_s22   ;;  %s2576_s16 = sld [smem:[#allocation24_spill]] }
  0x2d   : > { %v1696_v30 = vld [vmem:[%s2567_s29 + $0x20] sm:$0xff]  ;;  %v1709_v45 = vld [vmem:[%s2572_s4 + $0x28] sm:$0xff]  ;;  %s1686_s18 = sshll.u32 %s2450_s20, 2  ;;  %s1769_s30 = sshll.u32 %s2574_s23, 2 }
  0x2e   : > { %684 = vmatpush.msrb.mxu1 %v667_v4  ;;  %714 = vmatpush.msra.mxu2 %v693_v22  ;;  %v1702_v31 = vld [vmem:[%s2569_s3 + $0x20] sm:$0xff]  ;;  %s2578_s22 = sld [smem:[#allocation26_spill]]  ;;  %s610_s24 = scalar_lea.vmem [#allocation3], %s1686_s18 }
  0x2f   : > { %v1820_v37 = vld [vmem:[%s2519_s7] ss:$0 sm:$0xff]  ;;  %v1821_v40 = vld [vmem:[%s2518_s6 + $0x1] ss:$0 sm:$0xff]  ;;  %s1559_s26 = scalar_lea.hbm %s2577_s2, %s1769_s30  ;;  %s1544_s23 = scalar_lea.sflag [#allocation4], %s2450_s20 }
  0x30   : > { %685 = vmatpush.msrb.mxu1 %v666_v5  ;;  %715 = vmatpush.msra.mxu2 %v692_v23  ;;  %v1708_v47 = vld [vmem:[%s2572_s4 + $0x20] sm:$0xff]  ;;  %s1563_s19 = sshll.u32 %s1559_s26, 4  ;;  %s1879_s26 = scalar_lea.hbm %s2577_s2, 8  ;;  %s1564_s19 = int_to_ptr.hbm [resolvable:$true] %s1563_s19 }
  0x31   : > { %v1822_v59 = vld [vmem:[%s2517_s5 + $0x1] ss:$0 sm:$0xff]  ;;  %s1873_s21 = sshra.s32 %s1564_s19, 4  ;;  %s1874_s21 = int_to_ptr.hbm [resolvable:$true] %s1873_s21 }
  0x32   : > { %686 = vmatpush.msrb.mxu1 %v665_v8  ;;  %v2138_v10 = vld [vmem:[#allocation2] sm:$0xff]  ;;  %818 = vmatpush.msrb.mxu2 %v1699_v24  ;;  %v1723_v8 = vld [vmem:[%s2567_s29 + $0x58] sm:$0xff]  ;;  %p1880_p0 = scmp.lt.s32.totalorder %s1874_s21, %s2577_s2 }
  0x33   : > { %1690 = vmatmul.msk.f32.vlgmr.msra.gmra.mxu1 %vm640_vm1, %v2138_v10  ;;  %1692 = vmatmul.msk.f32.vlgmr.msra.gmra.mxu2 %vm640_vm1, %v2138_v10  ;;  %v795_v62 = vld [vmem:[%s2520_s8] sm:$0xff] }
  0x34   : > { %687 = vmatpush.msrb.mxu1 %v664_v9  ;;  %819 = vmatpush.msrb.mxu2 %v1698_v25  ;;  %v1823_v9 = vld [vmem:[%s2519_s7 + $0x1] ss:$0 sm:$0xff]  ;;  %s1573_s25 = scalar_lea.hbm %s2578_s22, %s1769_s30  ;;  %s1875_s30 = scalar_lea.hbm %s1874_s21, 4 }
  0x35   : > { %p1876_p11 = scmp.ne.s32.totalorder %s1874_s21, %s1875_s30  ;;  %p1881_p1 = scmp.lt.s32.totalorder %s1879_s26, %s1875_s30 }
  0x36   : > { %848 = vmatpush.msra.mxu1 %v1705_v26  ;;  %820 = vmatpush.msrb.mxu2 %v1697_v28 }
  0x37   : > { %p1877_p12 = pnand %p1876_p11, %p2094_p5  ;;  %p1882_p2 = por %p1881_p1, %p1880_p0 }
  0x38   : > { %849 = vmatpush.msra.mxu1 %v1704_v27  ;;  %821 = vmatpush.msrb.mxu2 %v1696_v30 }
  0x39   : > { %p1878_p13 = pneg %p1877_p12 }
  0x3a   : > { %850 = vmatpush.msra.mxu1 %v1703_v29  ;;  %878 = vmatpush.msra.mxu2 %v1711_v43 }
  0x3b   : > { %1691 = vmatmul.msk.f32.vlgmr.msrb.gmra.mxu1 %vm640_vm1, %v2138_v10  ;;  %1701 = vmatmul.msk.f32.vlgmr.msrb.gmra.mxu2 %vm640_vm1, %v2138_v10  ;;  %p1883_p3 = pnand %p1882_p2, %p1878_p13 }
  0x3c   : > { %851 = vmatpush.msra.mxu1 %v1702_v31  ;;  %879 = vmatpush.msra.mxu2 %v1710_v44  ;;  %v1735_v44 = vld [vmem:[%s2572_s4 + $0x58] sm:$0xff] }
  0x3e   : > { %880 = vmatpush.msra.mxu2 %v1709_v45  ;;  %v1734_v45 = vld [vmem:[%s2572_s4 + $0x50] sm:$0xff] }
  0x40   : > { %881 = vmatpush.msra.mxu2 %v1708_v47  ;;  %v1732_v47 = vld [vmem:[%s2572_s4 + $0x40] sm:$0xff] }
  0x42   : > { %1003 = vmatpush.msrb.mxu2 %v795_v62  ;;  %v1745_v62 = vld [vmem:[%s2567_s29 + $0x70] sm:$0xff] }
  0x43   : > { %1707 = vmatmul.msk.f32.vlgmr.msra.gmra.mxu1 %vm640_vm1, %v2138_v10  ;;  %1713 = vmatmul.msk.f32.vlgmr.msra.gmra.mxu2 %vm640_vm1, %v2138_v10 }
  0xb0   : > { %v661_v11 = vpop.f32.mrf.mxu1 }
  0xb1   : > { %v662_v16 = vadd.f32 %v1818_v13, %v661_v11  ;;  %v1722_v13 = vld [vmem:[%s2567_s29 + $0x50] sm:$0xff] }
  0xb6   : > { %v717_v38 = vpop.f32.mrf.mxu2 }
  0xb7   : > { %v718_v39 = vadd.f32 %v1820_v37, %v717_v38 }
  0xb8   : > { %v689_v14 = vpop.f32.mrf.mxu1 }
  0xb9   : > { %v690_v15 = vadd.f32 %v1819_v12, %v689_v14  ;;  %v1729_v14 = vld [vmem:[%s2569_s3 + $0x58] sm:$0xff] }
  0xbb   : > { %1693 = vmatpush.xpose.msk.msra.mxu3 %vm720_vm2, %v690_v15  ;;  %v1721_v15 = vld [vmem:[%s2567_s29 + $0x48] sm:$0xff] }
  0xbe   : > { %1694 = vmatmul.msk.f32.vlgmr.msra.gmra.mxu3 %vm720_vm2, %v662_v16  ;;  %v823_v60 = vpop.f32.mrf.mxu2  ;;  %v1728_v16 = vld [vmem:[%s2569_s3 + $0x50] sm:$0xff] }
  0xbf   : > { %790 = vmatpush.msrb.mxu3 %v718_v39  ;;  %v824_v61 = vadd.f32 %v1822_v59, %v823_v60  ;;  %v1750_v59 = vld [vmem:[%s2569_s3 + $0x68] sm:$0xff]  ;;  %v1749_v60 = vld [vmem:[%s2569_s3 + $0x60] sm:$0xff] }
  0xc0   : > { %v853_v41 = vpop.f32.mrf.mxu1 }
  0xc1   : > { %v854_v42 = vadd.f32 %v1821_v40, %v853_v41 }
  0xc3   : > { %1714 = vmatpush.xpose.msk.msra.mxu3 %vm720_vm2, %v854_v42 }
  0xc6   : > { %v883_v11 = vpop.f32.mrf.mxu2 }
  0xc7   : > { %v884_v12 = vadd.f32 %v1823_v9, %v883_v11 }
  0xc9   : > { %955 = vmatpush.msra.mxu0 %v884_v12 }
  0xcb   : > { %1060 = vmatpush.msrb.mxu0 %v1729_v14 }
  0xcd   : > { %1061 = vmatpush.msrb.mxu0 %v1728_v16 }
 0x141   : > { %v744_v17 = vpop.f32.mrf.mxu3 }
 0x142   : > { %v747_v18 = vmul.f32 0.35355338, %v744_v17  ;;  %v1720_v17 = vld [vmem:[%s2567_s29 + $0x40] sm:$0xff] }
 0x144   : > { %v748_v19 = vsel %vm720_vm2, %v747_v18, -inf }
 0x145   : > { %749 = vmax.xlane.f32.xlu0 %v748_v19  ;;  %v1726_v19 = vld [vmem:[%s2569_s3 + $0x40] sm:$0xff] }
 0x1b8   : > { %v750_v32 = vpop.xlane.xlu0 %749 }
 0x1b9   : > { %v751_v33 = vsub.f32 %v747_v18, %v750_v32  ;;  %v1727_v18 = vld [vmem:[%s2569_s3 + $0x48] sm:$0xff] }
 0x1ba   : > { %1062 = vmatpush.msrb.mxu0 %v1727_v18  ;;  %v1717_v32 = vld [vmem:[%s2520_s8 + $0x8] sm:$0xff] }
 0x1bb   : > { %v752_v34 = vmul.f32 1.442695, %v751_v33  ;;  %980 = vmatpush.msrb.mxu1 %v1717_v32 }
 0x1bc   : > { %1063 = vmatpush.msrb.mxu0 %v1726_v19  ;;  %v1828_v19 = vld [vmem:[%s2517_s5 + $0x3] ss:$0 sm:$0xff] }
 0x1bd   : > { %1837 = vpow2.f32 %v752_v34  ;;  %v1824_v34 = vld [vmem:[%s2518_s6 + $0x2] ss:$0 sm:$0xff]  ;;  %1090 = vmatpush.msra.mxu1 %v1735_v44 }
 0x1bf   : > { %1091 = vmatpush.msra.mxu1 %v1734_v45 }
 0x1c3   : > { %v1838_v35 = vpop.eup %1837 }
 0x1c4   : > { %v754_v36 = vsel %vm720_vm2, %v1838_v35, 0.0 }
 0x1c5   : > { %755 = vadd.xlane.f32.xlu0 %v754_v36 }
 0x238   : > { %v756_v46 = vpop.xlane.xlu0 %755 }
 0x239   : > { %1839 = vrcp.f32 %v756_v46  ;;  %v768_v51 = vand.u32 2147483648, %v756_v46  ;;  %v766_v53 = vand.u32 2147483647, %v756_v46  ;;  %vm762_vm4 = vweird.f32 %v756_v46 }
 0x23b   : > { %v769_v55 = vor.u32 1.1754944e-38, %v768_v51  ;;  %vm767_vm6 = vcmp.eq.f32.partialorder %v766_v53, 8.507059e+37 }
 0x23f   : > { %v1840_v48 = vpop.eup %1839 }
 0x240   : > { %v758_v49 = vmul.f32 %v1840_v48, %v756_v46  ;;  %vm763_vm3 = vweird.f32 %v1840_v48  ;;  %v1733_v46 = vld [vmem:[%s2572_s4 + $0x48] sm:$0xff] }
 0x241   : > { %vm764_vm5 = vmor %vm762_vm4, %vm763_vm3  ;;  %1092 = vmatpush.msra.mxu1 %v1733_v46 }
 0x242   : > { %v759_v50 = vsub.f32 1.0, %v758_v49 }
 0x243   : > { %1093 = vmatpush.msra.mxu1 %v1732_v47 }
 0x244   : > { %v760_v52 = vmul.f32 %v1840_v48, %v759_v50 }
 0x246   : > { %v761_v54 = vadd.f32 %v1840_v48, %v760_v52 }
 0x248   : > { %v765_v56 = vsel %vm764_vm5, %v1840_v48, %v761_v54  ;;  %v1826_v54 = vld [vmem:[%s2519_s7 + $0x2] ss:$0 sm:$0xff] }
 0x249   : > { %v770_v57 = vsel %vm767_vm6, %v769_v55, %v765_v56  ;;  %v1752_v55 = vld [vmem:[%s2569_s3 + $0x78] sm:$0xff] }
 0x24a   : > { %v771_v58 = vmul.f32 %v1838_v35, %v770_v57  ;;  %v1825_v35 = vld [vmem:[%s2517_s5 + $0x2] ss:$0 sm:$0xff] }
 0x24c   : > { %1695 = vmatmul.msk.f32.vlgmr.msrb.gmra.mxu3 %vm720_vm2, %v771_v58  ;;  %v1751_v58 = vld [vmem:[%s2569_s3 + $0x70] sm:$0xff] }
 0x24d   : > { %1030 = vmatpush.msrb.mxu3 %v1723_v8 }
 0x24f   : > { %1031 = vmatpush.msrb.mxu3 %v1722_v13 }
 0x251   : > { %1032 = vmatpush.msrb.mxu3 %v1721_v15  ;;  %v1827_v15 = vld [vmem:[%s2518_s6 + $0x3] ss:$0 sm:$0xff] }
 0x253   : > { %1033 = vmatpush.msrb.mxu3 %v1720_v17 }
 0x254   : > { %1715 = vmatmul.msk.f32.vlgmr.msra.gmra.mxu3 %vm720_vm2, %v824_v61  ;;  %v1746_v61 = vld [vmem:[%s2567_s29 + $0x78] sm:$0xff] }
 0x25c   : > { %1725 = vmatmul.msk.f32.vlgmr.msrb.gmra.mxu3 %vm640_vm1, %v2138_v10 }
 0x2cf   : > { %v792_v63 = vpop.f32.mrf.mxu3 }
 0x2d0   : > { %1719 = vmatmul.msk.f32.vlgmr.msrb.gmra.mxu2 %vm720_vm2, %v792_v63  ;;  %v1741_v63 = vld [vmem:[%s2520_s8 + $0x10] sm:$0xff] }
 0x2d7   : > { %v909_v0 = vpop.f32.mrf.mxu3 }
 0x2d8   : > { %v912_v1 = vmul.f32 0.35355338, %v909_v0  ;;  %v1744_v0 = vld [vmem:[%s2567_s29 + $0x68] sm:$0xff] }
 0x2da   : > { %v913_v2 = vsel %vm720_vm2, %v912_v1, -inf }
 0x2db   : > { %914 = vmax.xlane.f32.xlu1 %v913_v2 }
 0x2df   : > { %v1035_v36 = vpop.f32.mrf.mxu3 }
 0x2e0   : > { %v1036_v39 = vadd.f32 %v1825_v35, %v1035_v36 }
 0x34e   : > { %v915_v3 = vpop.xlane.xlu1 %914 }
 0x34f   : > { %v916_v4 = vsub.f32 %v912_v1, %v915_v3  ;;  %v1743_v1 = vld [vmem:[%s2567_s29 + $0x60] sm:$0xff] }
 0x351   : > { %v917_v5 = vmul.f32 1.442695, %v916_v4 }
 0x353   : > { %1841 = vpow2.f32 %v917_v5  ;;  %v2272_v40 = vpop.f32.mrf.mxu2 }
 0x359   : > { %v1842_v6 = vpop.eup %1841 }
 0x35a   : > { %v919_v7 = vsel %vm720_vm2, %v1842_v6, 0.0 }
 0x35b   : > { %920 = vadd.xlane.f32.xlu1 %v919_v7 }
 0x3ce   : > { %v921_v20 = vpop.xlane.xlu1 %920 }
 0x3cf   : > { %1843 = vrcp.f32 %v921_v20  ;;  %v933_v24 = vand.u32 2147483648, %v921_v20  ;;  %v931_v26 = vand.u32 2147483647, %v921_v20  ;;  %vm927_vm8 = vweird.f32 %v921_v20 }
 0x3d1   : > { %v934_v28 = vor.u32 1.1754944e-38, %v933_v24  ;;  %vm932_vm10 = vcmp.eq.f32.partialorder %v931_v26, 8.507059e+37 }
 0x3d5   : > { %v1844_v21 = vpop.eup %1843 }
 0x3d6   : > { %v923_v22 = vmul.f32 %v1844_v21, %v921_v20  ;;  %vm928_vm7 = vweird.f32 %v1844_v21 }
 0x3d7   : > { %vm929_vm9 = vmor %vm927_vm8, %vm928_vm7 }
 0x3d8   : > { %v924_v23 = vsub.f32 1.0, %v923_v22 }
 0x3da   : > { %v925_v25 = vmul.f32 %v1844_v21, %v924_v23 }
 0x3dc   : > { %v926_v27 = vadd.f32 %v1844_v21, %v925_v25 }
 0x3de   : > { %v930_v29 = vsel %vm929_vm9, %v1844_v21, %v926_v27 }
 0x3df   : > { %v935_v30 = vsel %vm932_vm10, %v934_v28, %v930_v29  ;;  %v1758_v28 = vld [vmem:[%s2572_s4 + $0x78] sm:$0xff]  ;;  %v1757_v29 = vld [vmem:[%s2572_s4 + $0x70] sm:$0xff] }
 0x3e0   : > { %v936_v31 = vmul.f32 %v1842_v6, %v935_v30  ;;  %v1756_v30 = vld [vmem:[%s2572_s4 + $0x68] sm:$0xff] }
 0x3e2   : > { %1716 = vmatmul.msk.f32.vlgmr.msra.gmra.mxu0 %vm720_vm2, %v936_v31  ;;  %v1755_v31 = vld [vmem:[%s2572_s4 + $0x60] sm:$0xff]  ;;  %s1577_s4 = sshll.u32 %s1573_s25, 4  ;;  %s2466_s4 = int_to_ptr.hbm [resolvable:$true] %s1577_s4 }
 0x3e3   : > { %1192 = vmatpush.msra.mxu0 %v1741_v63 }
 0x3ea   : > { %1731 = vmatmul.msk.f32.vlgmr.msrb.gmra.mxu0 %vm640_vm1, %v2138_v10 }
 0x45f   : > { %v957_v33 = vpop.f32.mrf.mxu0 }
 0x460   : > { %1718 = vmatmul.msk.f32.vlgmr.msrb.gmra.mxu1 %vm720_vm2, %v957_v33 }
 0x461   : > { %1220 = vmatpush.msrb.mxu1 %v1746_v61 }
 0x463   : > { %1221 = vmatpush.msrb.mxu1 %v1745_v62 }
 0x465   : > { %1222 = vmatpush.msrb.mxu1 %v1744_v0 }
 0x467   : > { %v1065_v37 = vpop.f32.mrf.mxu0  ;;  %1223 = vmatpush.msrb.mxu1 %v1743_v1 }
 0x468   : > { %v1066_v38 = vadd.f32 %v1824_v34, %v1065_v37  ;;  %1737 = vmatmul.msk.f32.vlgmr.msra.gmra.mxu1 %vm640_vm1, %v2138_v10  ;;  %v1829_v37 = vld [vmem:[%s2519_s7 + $0x3] ss:$0 sm:$0xff] }
 0x46a   : > { %1738 = vmatpush.xpose.msk.msra.mxu2 %vm720_vm2, %v1066_v38 }
 0x46d   : > { %1739 = vmatmul.msk.f32.vlgmr.msra.gmra.mxu2 %vm720_vm2, %v1036_v39 }
 0x46e   : > { %1250 = vmatpush.msrb.mxu2 %v1752_v55 }
 0x470   : > { %1251 = vmatpush.msrb.mxu2 %v1751_v58  ;;  %1748 = vmatmul.msk.f32.vlgmr.msrb.gmra.mxu1 %vm640_vm1, %v2138_v10 }
 0x472   : > { %1252 = vmatpush.msrb.mxu2 %v1750_v59 }
 0x474   : > { %1253 = vmatpush.msrb.mxu2 %v1749_v60  ;;  %v1955_v60 = vmov 32.0  }
 0x475   : > { %1754 = vmatmul.msk.f32.vlgmr.msrb.gmra.mxu2 %vm640_vm1, %v2138_v10 }
 0x4dd   : > { %v982_v53 = vpop.f32.mrf.mxu1 }
 0x4de   : > { %v1006_v22 = vadd.f32 %v2272_v40, %v982_v53  ;;  %v1764_v40 = vld [vmem:[%s2520_s8 + $0x18] sm:$0xff] }
 0x4df   : > { %1382 = vmatpush.msra.mxu2 %v1764_v40  ;;  %v1467_v40 = vld [vmem:[%s2526_s14 + $0x10] sm:$0xff] }
 0x4e5   : > { %v1095_v56 = vpop.f32.mrf.mxu1 }
 0x4e6   : > { %v1096_v57 = vadd.f32 %v1826_v54, %v1095_v56  ;;  %v1830_v54 = vld [vmem:[%s2521_s9] ss:$0 sm:$0xff] }
 0x4e8   : > { %1167 = vmatpush.msra.mxu3 %v1096_v57 }
 0x4ea   : > { %1280 = vmatpush.msrb.mxu3 %v1758_v28  ;;  %v1470_v28 = vld [vmem:[%s2526_s14 + $0x28] sm:$0xff] }
 0x4ec   : > { %1281 = vmatpush.msrb.mxu3 %v1757_v29 }
 0x4ed   : > { %v1225_v20 = vpop.f32.mrf.mxu1 }
 0x4ee   : > { %v1226_v21 = vadd.f32 %v1828_v19, %v1225_v20  ;;  %1282 = vmatpush.msrb.mxu3 %v1756_v30  ;;  %v1476_v19 = vld [vmem:[%s2526_s14 + $0x58] sm:$0xff]  ;;  %v1475_v20 = vld [vmem:[%s2526_s14 + $0x50] sm:$0xff]  ;;  %v1469_v30 = vld [vmem:[%s2526_s14 + $0x20] sm:$0xff] }
 0x4f0   : > { %v1121_v41 = vpop.f32.mrf.mxu2  ;;  %1283 = vmatpush.msrb.mxu3 %v1755_v31 }
 0x4f1   : > { %v1124_v42 = vmul.f32 0.35355338, %v1121_v41 }
 0x4f3   : > { %v1125_v43 = vsel %vm720_vm2, %v1124_v42, -inf }
 0x4f4   : > { %1126 = vmax.xlane.f32.xlu2 %v1125_v43 }
 0x4f8   : > { %v1255_v16 = vpop.f32.mrf.mxu2 }
 0x4f9   : > { %v1256_v17 = vadd.f32 %v1827_v15, %v1255_v16 }
 0x4fb   : > { %1761 = vmatpush.xpose.msk.msrb.mxu0 %vm720_vm2, %v1256_v17  ;;  %v1477_v17 = vld [vmem:[%s2526_s14 + $0x60] sm:$0xff] }
 0x567   : > { %v1127_v48 = vpop.xlane.xlu2 %1126 }
 0x568   : > { %v1128_v49 = vsub.f32 %v1124_v42, %v1127_v48 }
 0x56a   : > { %v1129_v50 = vmul.f32 1.442695, %v1128_v49 }
 0x56c   : > { %1845 = vpow2.f32 %v1129_v50 }
 0x572   : > { %v1846_v51 = vpop.eup %1845 }
 0x573   : > { %v1131_v52 = vsel %vm720_vm2, %v1846_v51, 0.0 }
 0x574   : > { %1132 = vadd.xlane.f32.xlu2 %v1131_v52 }
 0x5e7   : > { %v1133_v2 = vpop.xlane.xlu2 %1132 }
 0x5e8   : > { %1847 = vrcp.f32 %v1133_v2  ;;  %v1145_v6 = vand.u32 2147483648, %v1133_v2  ;;  %v1143_v8 = vand.u32 2147483647, %v1133_v2  ;;  %vm1139_vm12 = vweird.f32 %v1133_v2 }
 0x5ea   : > { %v1146_v11 = vor.u32 1.1754944e-38, %v1145_v6  ;;  %vm1144_vm14 = vcmp.eq.f32.partialorder %v1143_v8, 8.507059e+37  ;;  %v1435_v8 = vld [vmem:[%s2524_s12 + $0x10] sm:$0xff] }
 0x5ee   : > { %v1848_v3 = vpop.eup %1847 }
 0x5ef   : > { %v1135_v4 = vmul.f32 %v1848_v3, %v1133_v2  ;;  %vm1140_vm11 = vweird.f32 %v1848_v3 }
 0x5f0   : > { %vm1141_vm13 = vmor %vm1139_vm12, %vm1140_vm11 }
 0x5f1   : > { %v1136_v5 = vsub.f32 1.0, %v1135_v4 }
 0x5f3   : > { %v1137_v7 = vmul.f32 %v1848_v3, %v1136_v5 }
 0x5f5   : > { %v1138_v9 = vadd.f32 %v1848_v3, %v1137_v7  ;;  %v1436_v7 = vld [vmem:[%s2524_s12 + $0x18] sm:$0xff] }
 0x5f7   : > { %v1142_v12 = vsel %vm1141_vm13, %v1848_v3, %v1138_v9  ;;  %v1434_v9 = vld [vmem:[%s2524_s12 + $0x8] sm:$0xff] }
 0x5f8   : > { %v1147_v13 = vsel %vm1144_vm14, %v1146_v11, %v1142_v12  ;;  %v1433_v11 = vld [vmem:[%s2524_s12] sm:$0xff]  ;;  %v1480_v12 = vld [vmem:[%s2526_s14 + $0x78] sm:$0xff] }
 0x5f9   : > { %v1148_v14 = vmul.f32 %v1846_v51, %v1147_v13  ;;  %v1479_v13 = vld [vmem:[%s2526_s14 + $0x70] sm:$0xff] }
 0x5fb   : > { %1740 = vmatmul.msk.f32.vlgmr.msra.gmra.mxu3 %vm720_vm2, %v1148_v14  ;;  %v1478_v14 = vld [vmem:[%s2526_s14 + $0x68] sm:$0xff] }
 0x5fc   : > { %1456 = vmatpush.msra.mxu3 %v1436_v7 }
 0x5fe   : > { %1457 = vmatpush.msra.mxu3 %v1435_v8 }
 0x600   : > { %1458 = vmatpush.msra.mxu3 %v1434_v9 }
 0x602   : > { %1459 = vmatpush.msra.mxu3 %v1433_v11 }
 0x603   : > { %1760 = vmatmul.msk.f32.vlgmr.msrb.gmra.mxu3 %vm640_vm1, %v2138_v10 }
 0x67e   : > { %v1169_v18 = vpop.f32.mrf.mxu3 }
 0x67f   : > { %1742 = vmatmul.msk.f32.vlgmr.msra.gmra.mxu0 %vm720_vm2, %v1169_v18 }
 0x680   : > { %1485 = vmatpush.msra.mxu0 %v1480_v12 }
 0x682   : > { %1486 = vmatpush.msra.mxu0 %v1479_v13 }
 0x684   : > { %1487 = vmatpush.msra.mxu0 %v1478_v14 }
 0x686   : > { %v1285_v38 = vpop.f32.mrf.mxu3  ;;  %1488 = vmatpush.msra.mxu0 %v1477_v17 }
 0x687   : > { %1762 = vmatmul.msk.f32.vlgmr.msrb.gmra.mxu0 %vm720_vm2, %v1226_v21  ;;  %v1286_v39 = vadd.f32 %v1829_v37, %v1285_v38  ;;  %v1474_v21 = vld [vmem:[%s2526_s14 + $0x48] sm:$0xff]  ;;  %v1832_v37 = vld [vmem:[%s2523_s11] ss:$0 sm:$0xff] }
 0x688   : > { %1489 = vmatpush.msra.mxu0 %v1476_v19 }
 0x689   : > { %1357 = vmatpush.msra.mxu1 %v1286_v39 }
 0x68a   : > { %1490 = vmatpush.msra.mxu0 %v1475_v20 }
 0x68c   : > { %1491 = vmatpush.msra.mxu0 %v1474_v21 }
 0x6fc   : > { %v1194_v23 = vpop.f32.mrf.mxu0 }
 0x6fd   : > { %v1197_v24 = vadd.f32 %v1194_v23, %v1006_v22  ;;  %v1473_v22 = vld [vmem:[%s2526_s14 + $0x40] sm:$0xff] }
 0x6fe   : > { %1492 = vmatpush.msra.mxu0 %v1473_v22 }
 0x704   : > { %v1311_v25 = vpop.f32.mrf.mxu0 }
 0x705   : > { %v1314_v26 = vmul.f32 0.35355338, %v1311_v25 }
 0x707   : > { %v1315_v27 = vsel %vm720_vm2, %v1314_v26, -inf }
 0x708   : > { %1316 = vmax.xlane.f32.xlu0 %v1315_v27 }
 0x77b   : > { %v1317_v32 = vpop.xlane.xlu0 %1316 }
 0x77c   : > { %v1318_v33 = vsub.f32 %v1314_v26, %v1317_v32  ;;  %v1471_v26 = vld [vmem:[%s2526_s14 + $0x30] sm:$0xff]  ;;  %v1468_v32 = vld [vmem:[%s2526_s14 + $0x18] sm:$0xff] }
 0x77e   : > { %v1319_v34 = vmul.f32 1.442695, %v1318_v33 }
 0x780   : > { %1849 = vpow2.f32 %v1319_v34  ;;  %v1831_v34 = vld [vmem:[%s2522_s10] ss:$0 sm:$0xff] }
 0x786   : > { %v1850_v35 = vpop.eup %1849 }
 0x787   : > { %v1321_v36 = vsel %vm720_vm2, %v1850_v35, 0.0 }
 0x788   : > { %1322 = vadd.xlane.f32.xlu1 %v1321_v36 }
 0x7fb   : > { %v1323_v41 = vpop.xlane.xlu1 %1322 }
 0x7fc   : > { %1851 = vrcp.f32 %v1323_v41  ;;  %v1335_v45 = vand.u32 2147483648, %v1323_v41  ;;  %v1333_v47 = vand.u32 2147483647, %v1323_v41  ;;  %vm1329_vm3 = vweird.f32 %v1323_v41 }
 0x7fd   : > { %1853 = vrcp.f32 %v1955_v60 }
 0x7fe   : > { %v1336_v49 = vor.u32 1.1754944e-38, %v1335_v45  ;;  %vm1334_vm5 = vcmp.eq.f32.partialorder %v1333_v47, 8.507059e+37  ;;  %v1834_v47 = vld [vmem:[%s2527_s15] ss:$0 sm:$0xff] }
 0x802   : > { %v1852_v42 = vpop.eup %1851 }
 0x803   : > { %v1325_v43 = vmul.f32 %v1852_v42, %v1323_v41  ;;  %vm1330_vm15 = vweird.f32 %v1852_v42  ;;  %v1854_v61 = vpop.eup %1853  ;;  %v1466_v41 = vld [vmem:[%s2526_s14 + $0x8] sm:$0xff] }
 0x804   : > { %vm1331_vm4 = vmor %vm1329_vm3, %vm1330_vm15  ;;  %v1400_v62 = vmul.f32 32.0, %v1854_v61 }
 0x805   : > { %v1326_v44 = vsub.f32 1.0, %v1325_v43  ;;  %v1833_v43 = vld [vmem:[%s2525_s13] ss:$0 sm:$0xff] }
 0x806   : > { %v1401_v63 = vsub.f32 1.0, %v1400_v62 }
 0x807   : > { %v1327_v46 = vmul.f32 %v1852_v42, %v1326_v44 }
 0x808   : > { %v1402_v0 = vmul.f32 %v1854_v61, %v1401_v63 }
 0x809   : > { %v1328_v48 = vadd.f32 %v1852_v42, %v1327_v46 }
 0x80a   : > { %v1403_v1 = vadd.f32 %v1854_v61, %v1402_v0 }
 0x80b   : > { %v1332_v50 = vsel %vm1331_vm4, %v1852_v42, %v1328_v48  ;;  %v1465_v42 = vld [vmem:[%s2526_s14] sm:$0xff] }
 0x80c   : > { %v1337_v51 = vsel %vm1334_vm5, %v1336_v49, %v1332_v50 }
 0x80d   : > { %v1338_v52 = vmul.f32 %v1850_v35, %v1337_v51 }
 0x80f   : > { %1763 = vmatmul.msk.f32.vlgmr.msra.gmra.mxu1 %vm720_vm2, %v1338_v52 }
 0x88c   : > { %v1359_v53 = vpop.f32.mrf.mxu1 }
 0x88d   : > { %1765 = vmatmul.msk.f32.vlgmr.msra.gmra.mxu2 %vm720_vm2, %v1359_v53  ;;  %vm1404_vm2 = vweird.f32 %v1854_v61 }
 0x88e   : > { %v2364_v2 = vsel %vm1404_vm2, %v1854_v61, %v1403_v1 }
 0x910   : > { %v1384_v55 = vpop.f32.mrf.mxu2 }
 0x911   : > { %v1387_v56 = vadd.f32 %v1384_v55, %v1197_v24  ;;  %v1472_v24 = vld [vmem:[%s2526_s14 + $0x38] sm:$0xff] }
 0x912   : > { %1493 = vmatpush.msra.mxu0 %v1472_v24 }
 0x913   : > { %v1392_v57 = vadd.f32 %v1830_v54, %v1387_v56 }
 0x914   : > { %1494 = vmatpush.msra.mxu0 %v1471_v26 }
 0x915   : > { %v1393_v58 = vadd.f32 %v1392_v57, %v2138_v10 }
 0x916   : > { %1495 = vmatpush.msra.mxu0 %v1470_v28 }
 0x917   : > { %v1396_v59 = vsel %vm640_vm1, %v1393_v58, 0.0 }
 0x918   : > { %1397 = vadd.xlane.f32.xlu2 %v1396_v59  ;;  %1496 = vmatpush.msra.mxu0 %v1469_v30 }
 0x91a   : > { %1497 = vmatpush.msra.mxu0 %v1468_v32 }
 0x91c   : > { %1498 = vmatpush.msra.mxu0 %v1467_v40 }
 0x91e   : > { %1499 = vmatpush.msra.mxu0 %v1466_v41 }
 0x920   : > { %1500 = vmatpush.msra.mxu0 %v1465_v42 }
 0x98b   : > { %v1398_v3 = vpop.xlane.xlu2 %1397 }
 0x98c   : > { %v1406_v4 = vmul.f32 %v2364_v2, %v1398_v3  ;;  %v1835_v3 = vld [vmem:[%s2575_s0] ss:$0 sm:$0xff]  ;;  %s1561_s0 = sshll.u32 %s610_s24, 4  ;;  %s1562_s0 = int_to_ptr.vmem [resolvable:$true] %s1561_s0 }
 0x98e   : > { %v1407_v5 = vsub.f32 %v1393_v58, %v1406_v4 }
 0x990   : > { %v1408_v6 = vmul.f32 %v1407_v5, %v1407_v5 }
 0x992   : > { %v1409_v10 = vsel %vm640_vm1, %v1408_v6, 0.0 }
 0x993   : > { %1410 = vadd.xlane.f32.xlu0 %v1409_v10 }
 0xa06   : > { %v1411_v15 = vpop.xlane.xlu0 %1410 }
 0xa07   : > { %v1412_v16 = vmul.f32 %v1411_v15, %v2364_v2 }
 0xa09   : > { %v1413_v18 = vadd.f32 1e-05, %v1412_v16 }
 0xa0b   : > { %1855 = vrsqrt.f32 %v1413_v18  ;;  %vm1420_vm7 = vweird.f32 %v1413_v18 }
 0xa11   : > { %v1856_v23 = vpop.eup %1855 }
 0xa12   : > { %v1415_v25 = vmul.f32 %v1856_v23, %v1413_v18  ;;  %vm1421_vm6 = vweird.f32 %v1856_v23 }
 0xa13   : > { %vm1422_vm8 = vmor %vm1420_vm7, %vm1421_vm6 }
 0xa14   : > { %v1416_v27 = vmul.f32 %v1856_v23, %v1415_v25 }
 0xa16   : > { %v1417_v29 = vmul.f32 0.5, %v1416_v27 }
 0xa18   : > { %v1418_v31 = vsub.f32 1.5, %v1417_v29 }
 0xa1a   : > { %v1419_v33 = vmul.f32 %v1856_v23, %v1418_v31 }
 0xa1c   : > { %v1423_v35 = vsel %vm1422_vm8, %v1856_v23, %v1419_v33 }
 0xa1d   : > { %v1424_v36 = vmul.f32 %v1423_v35, %v1407_v5 }
 0xa1f   : > { %v1428_v38 = vmul.f32 %v1831_v34, %v1424_v36 }
 0xa21   : > { %v1432_v39 = vadd.f32 %v1832_v37, %v1428_v38 }
 0xa23   : > { %1766 = vmatmul.msk.f32.vlgmr.msra.gmra.mxu3 %vm640_vm1, %v1432_v39 }
 0xaa6   : > { %v1461_v44 = vpop.f32.mrf.mxu3 }
 0xaa7   : > { %v1462_v45 = vadd.f32 %v1833_v43, %v1461_v44 }
 0xaa9   : > { %v1464_v46 = vmax.f32 %v1462_v45, 0.0 }
 0xaab   : > { %1501 = vmatmul.f32.vlgmr.msra.gmra.mxu0 %v1464_v46 }
 0xb28   : > { %v1502_v48 = vpop.f32.mrf.mxu0 }
 0xb29   : > { %v1503_v49 = vadd.f32 %v1834_v47, %v1502_v48 }
 0xb2b   : > { %v1505_v50 = vadd.f32 %v1503_v49, %v1432_v39 }
 0xb2d   : > { %v1508_v51 = vsel %vm640_vm1, %v1505_v50, 0.0 }
 0xb2e   : > { %1509 = vadd.xlane.f32.xlu1 %v1508_v51 }
 0xba1   : > { %v1510_v52 = vpop.xlane.xlu1 %1509 }
 0xba2   : > { %v1511_v53 = vmul.f32 %v1510_v52, %v2364_v2 }
 0xba4   : > { %v1512_v54 = vsub.f32 %v1505_v50, %v1511_v53 }
 0xba6   : > { %v1513_v55 = vmul.f32 %v1512_v54, %v1512_v54 }
 0xba8   : > { %v1514_v56 = vsel %vm640_vm1, %v1513_v55, 0.0 }
 0xba9   : > { %1515 = vadd.xlane.f32.xlu2 %v1514_v56 }
 0xc1c   : > { %v1516_v57 = vpop.xlane.xlu2 %1515 }
 0xc1d   : > { %v1517_v58 = vmul.f32 %v1516_v57, %v2364_v2  ;;  %v1836_v2 = vld [vmem:[%s2576_s16] ss:$0 sm:$0xff]  ;;  %s617_s16 = scalar_lea.vmem [#allocation5], %s1686_s18 }
 0xc1e   : > { %s1575_s3 = sshll.u32 %s617_s16, 4  ;;  %s2464_s3 = int_to_ptr.vmem [resolvable:$true] %s1575_s3 }
 0xc1f   : > { %v1518_v59 = vadd.f32 1e-05, %v1517_v58 }
 0xc21   : > { %1857 = vrsqrt.f32 %v1518_v59  ;;  %vm1525_vm10 = vweird.f32 %v1518_v59 }
 0xc27   : > { %v1858_v60 = vpop.eup %1857 }
 0xc28   : > { %v1520_v61 = vmul.f32 %v1858_v60, %v1518_v59  ;;  %vm1526_vm9 = vweird.f32 %v1858_v60 }
 0xc29   : > { %vm1527_vm11 = vmor %vm1525_vm10, %vm1526_vm9 }
 0xc2a   : > { %v1521_v62 = vmul.f32 %v1858_v60, %v1520_v61 }
 0xc2c   : > { %v1522_v63 = vmul.f32 0.5, %v1521_v62 }
 0xc2e   : > { %v1523_v0 = vsub.f32 1.5, %v1522_v63 }
 0xc30   : > { %v1524_v1 = vmul.f32 %v1858_v60, %v1523_v0 }
 0xc32   : > { %v1528_v4 = vsel %vm1527_vm11, %v1858_v60, %v1524_v1 }
 0xc33   : > { %v1529_v5 = vmul.f32 %v1528_v4, %v1512_v54 }
 0xc35   : > { %v1533_v6 = vmul.f32 %v1835_v3, %v1529_v5 }
 0xc37   : > { %v1537_v10 = vadd.f32 %v1836_v2, %v1533_v6 }
 0xc39   : > { %1538 = vst.msk [vmem:[#allocation2] sm:$0xff] %vm640_vm1, %v1537_v10 }
 0xc40   : > { %v1539_v7 = vld [vmem:[#allocation2] sm:$0xf]  ;;  %v1541_v8 = vld [vmem:[#allocation2 + $0x4] sm:$0xf] }
 0xc41   : > { %1540 = vst.msk [vmem:[%s610_s24] sm:$0xf] %vm627_vm0, %v1539_v7 }
 0xc42   : > { %1886 = shalt.err (!%p1883_p3)
}
 0xc43   : > { %1773 = dma.vmem_to_hbm [thread:$0]  (%p2094_p5), %s1562_s0, 64, %s1564_s19, %s1544_s23   ;;  %1542 = vst.msk [vmem:[%s617_s16] sm:$0xf] %vm627_vm0, %v1541_v8 }
 0xc44   : > { %s1549_s25 = scalar_lea.sflag [#allocation6], %s2450_s20  ;;  %s1901_s24 = sshra.s32 %s2466_s4, 4  ;;  %s1902_s24 = int_to_ptr.hbm [resolvable:$true] %s1901_s24 }
 0xc45   : > { %s1903_s18 = scalar_lea.hbm %s1902_s24, 4  ;;  %s1907_s1 = scalar_lea.hbm %s2578_s22, 8 }
 0xc46   : > { %p1904_p4 = scmp.ne.s32.totalorder %s1902_s24, %s1903_s18  ;;  %p1908_p9 = scmp.lt.s32.totalorder %s1902_s24, %s2578_s22 }
 0xc47   : > { %p1909_p10 = scmp.lt.s32.totalorder %s1907_s1, %s1903_s18 }
 0xc48   : > { %p1905_p7 = pnand %p1904_p4, %p2094_p5 }
 0xc49   : > { %p1910_p11 = por %p1909_p10, %p1908_p9 }
 0xc4a   : > { %p1906_p8 = pneg %p1905_p7 }
 0xc4c   : > { %p1911_p12 = pnand %p1910_p11, %p1906_p8 }
 0xc4e   : > { %1914 = shalt.err (!%p1911_p12)
}
 0xc4f   : > { %1774 = dma.vmem_to_hbm [thread:$0]  (%p2094_p5), %s2464_s3, 64, %s2466_s4, %s1549_s25  }
 0xc50 PF: > { %s2580_s20 = sld [smem:[#allocation12_spill]] }
 0xc51   : > { %s2581_s0 = sld [smem:[#allocation9_spill]] }
 0xc56   : > { %p1784_p13 = scmp.ge.s32.totalorder %s2580_s20, 2 }
 0xc57   : > { %s1589_s16 = sand.u32 1, %s2581_s0  }
 0xc58   : > { %p1778_p0 = pnand %p1784_p13, %p2098_p6  ;;  %s1590_s23 = scalar_lea.sflag [#allocation4], %s1589_s16 }
 0xc5a   : > { %p1779_p1 = pneg %p1778_p0 }
 0xc5c   : > { %1932 = dma.done.wait (%p1779_p1), %s1590_s23, 64  }
 0xc5d   : > { %1934 = vsyncadd (%p1779_p1), %s1590_s23, 4294967232  ;;  %s1600_s28 = scalar_lea.sflag [#allocation6], %s1589_s16 }
 0xc5e   : > { %1936 = dma.done.wait (%p1779_p1), %s1600_s28, 64  }
 0xc5f   : > { %1938 = vsyncadd (%p1779_p1), %s1600_s28, 4294967232  ;;  %s2583_s21 = sld [smem:[#allocation14_spill]] }
 0xc60   : > { %s2584_s0 = sld [smem:[#allocation10_spill]] }
 0xc61   : > { %s2585_s30 = sld [smem:[#allocation11_spill]] }
 0xc62   : > { %s2586_s20 = sld [smem:[#allocation15_spill]] }
 0xc65   : > { %p33_p5 = scmp.ge.s32.totalorder %s2583_s21, 4  }
 0xc67   :  { %35 = sbr.rel (!%p33_p5) target bundleno = 15 (0xf), region = 168 }
 0xc6c   :  { %1606 = vsyncpa [#allocation4], 1 }
 0xc6d   :  { %1608 = vsyncpa [#allocation4 + $0x1], 1 }
 0xc6e   :  { %1609 = vsyncpa [#allocation6], 1 }
 0xc6f   :  { %1611 = vsyncpa [#allocation6 + $0x1], 1 }

</bundles_post_ra>
